<compile_context>
chip_gen: v7x
topology: tpu7x:2x2x1
jax: 0.10.0
libtpu: 0.0.40
codegen_flags: <defaults>
</compile_context>

<pallas_src>
import functools
import math

import jax
import jax.numpy as jnp
from jax import lax
from jax.experimental import pallas as pl
from jax.experimental.pallas import tpu as pltpu


def encoder_block_kernel(x_full_ref, x_q_ref,
                         wq_ref, bq_ref, wk_ref, bk_ref, wv_ref, bv_ref,
                         wo_ref, bo_ref, w1_ref, b1_ref, w2_ref, b2_ref,
                         gamma_ref, beta_ref, out_ref,
                         k_scratch, v_scratch, *, num_heads, eps):
    qi = pl.program_id(1)

    # ---- K / V for the whole sequence, computed once per batch element ----
    @pl.when(qi == 0)
    def _():
        xf = x_full_ref[0].astype(jnp.bfloat16)                       # (S, D)
        k = jnp.dot(xf, wk_ref[...], preferred_element_type=jnp.float32) + bk_ref[...]
        v = jnp.dot(xf, wv_ref[...], preferred_element_type=jnp.float32) + bv_ref[...]
        k_scratch[...] = k.astype(jnp.bfloat16)
        v_scratch[...] = v.astype(jnp.bfloat16)

    x_q = x_q_ref[0]                                                  # (tq, D) f32
    tq, D = x_q.shape
    dh = D // num_heads
    scale = 1.0 / (dh ** 0.5)

    # ---- Q projection for this query tile; scale applied to q (not to scores) ----
    xq_bf = x_q.astype(jnp.bfloat16)
    q = (jnp.dot(xq_bf, wq_ref[...], preferred_element_type=jnp.float32)
         + bq_ref[...]) * scale
    q = q.astype(jnp.bfloat16)                                        # (tq, D)

    k_all = k_scratch[...]                                            # (S, D) bf16
    v_all = v_scratch[...]                                            # (S, D) bf16
    wo_all = wo_ref[...]                                              # (D, D) bf16

    # ---- per-head attention, fused with the output projection (no concat) ----
    # out1 = concat_h(head_h) @ W_o + b_o  ==  sum_h head_h @ W_o[h*dh:(h+1)*dh, :] + b_o
    acc = jnp.zeros((tq, D), jnp.float32)
    for h in range(num_heads):                                        # static, small
        qh = q[:, h * dh:(h + 1) * dh]                                # (tq, dh) bf16
        kh = k_all[:, h * dh:(h + 1) * dh]                            # (S,  dh) bf16
        vh = v_all[:, h * dh:(h + 1) * dh]
        # scores: contract the last dims directly (no transpose materialized)
        s = lax.dot_general(qh, kh, (((1,), (1,)), ((), ())),
                            preferred_element_type=jnp.float32)       # (tq, S)
        s = s - jnp.max(s, axis=-1, keepdims=True)
        e = jnp.exp(s)
        p = e * pl.reciprocal(jnp.sum(e, axis=-1, keepdims=True), approx=True)
        head = jnp.dot(p.astype(jnp.bfloat16), vh,
                       preferred_element_type=jnp.float32)            # (tq, dh)
        acc = acc + jnp.dot(head.astype(jnp.bfloat16),
                            wo_all[h * dh:(h + 1) * dh, :],
                            preferred_element_type=jnp.float32)
    out1 = acc + bo_ref[...]                                          # (tq, D) f32

    gamma = gamma_ref[...]                                            # (1, D)
    beta = beta_ref[...]                                              # (1, D)

    def layer_norm(t):
        mean = jnp.mean(t, axis=-1, keepdims=True)
        # torch.std(unbiased=False) == sqrt(mean((t - mean)^2)); note: / (std + eps)
        std = jnp.sqrt(jnp.mean((t - mean) ** 2, axis=-1, keepdims=True))
        inv = pl.reciprocal(std + eps, approx=True)
        return gamma * (t - mean) * inv + beta

    out2 = layer_norm(out1 + x_q)                                     # dropout(p=0) == identity

    # ---- feed-forward ----
    h1 = jnp.dot(out2.astype(jnp.bfloat16), w1_ref[...],
                 preferred_element_type=jnp.float32) + b1_ref[...]
    h1 = jnp.maximum(h1, 0.0)                                         # ReLU
    out3 = jnp.dot(h1.astype(jnp.bfloat16), w2_ref[...],
                   preferred_element_type=jnp.float32) + b2_ref[...]

    y = layer_norm(out2 + out3)                                       # dropout(p=0) == identity
    out_ref[0] = y.astype(out_ref.dtype)


def _pick_query_tile(S):
    # Query-tile length; must divide S and satisfy the (8, 128) sublane rule.
    if S > 256 and S % 256 == 0:
        return 256
    if S > 128 and S % 128 == 0:
        return 128
    return S  # small / ragged sequences: one tile per batch element


def encoder_block(x, params, *, num_heads, eps=1e-10):
    B, S, D = x.shape
    Fd = params["w1"].shape[1]
    tq = _pick_query_tile(S)
    nq = S // tq

    bf16 = jnp.bfloat16
    f32 = jnp.float32
    # weights in bf16 (MXU-native, half the DMA bytes / VMEM residency); biases stay f32
    wq = params["wq"].astype(bf16)
    wk = params["wk"].astype(bf16)
    wv = params["wv"].astype(bf16)
    wo = params["wo"].astype(bf16)
    w1 = params["w1"].astype(bf16)
    w2 = params["w2"].astype(bf16)

    kernel = functools.partial(encoder_block_kernel, num_heads=num_heads, eps=eps)

    def rep(shape):
        # constant-index block: resident across the whole grid
        return pl.BlockSpec(shape, lambda b, q, _n=len(shape): (0,) * _n)

    in_specs = [
        pl.BlockSpec((1, S, D), lambda b, q: (b, 0, 0)),    # x, full sequence (for K/V)
        pl.BlockSpec((1, tq, D), lambda b, q: (b, q, 0)),   # x, query tile
        rep((D, D)), rep((1, D)),                           # wq, bq
        rep((D, D)), rep((1, D)),                           # wk, bk
        rep((D, D)), rep((1, D)),                           # wv, bv
        rep((D, D)), rep((1, D)),                           # wo, bo
        rep((D, Fd)), rep((1, Fd)),                         # w1, b1
        rep((Fd, D)), rep((1, D)),                          # w2, b2
        rep((1, D)), rep((1, D)),                           # gamma, beta
    ]

    # Explicit VMEM budget: double-buffered inputs/outputs + K/V scratch + activations.
    def nbytes(shape, dtype):
        return math.prod(shape) * jnp.dtype(dtype).itemsize

    weights_b = 4 * nbytes((D, D), bf16) + nbytes((D, Fd), bf16) + nbytes((Fd, D), bf16)
    biases_b = 6 * nbytes((1, D), f32) + nbytes((1, Fd), f32) + 2 * nbytes((1, D), f32)
    xblocks_b = nbytes((S, D), f32) + nbytes((tq, D), f32) + nbytes((tq, D), x.dtype)
    scratch_b = 2 * nbytes((S, D), bf16)
    acts_b = (nbytes((tq, S), f32) + 4 * nbytes((tq, D), f32) + nbytes((tq, Fd), f32))
    est = 2 * (weights_b + biases_b + xblocks_b) + scratch_b + 2 * acts_b
    vmem_limit = int(min(max(est, 32 * 1024 * 1024), 96 * 1024 * 1024))

    return pl.pallas_call(
        kernel,
        out_shape=jax.ShapeDtypeStruct((B, S, D), x.dtype),
        grid=(B, nq),
        in_specs=in_specs,
        out_specs=pl.BlockSpec((1, tq, D), lambda b, q: (b, q, 0)),
        scratch_shapes=[pltpu.VMEM((S, D), bf16),   # K cache (per batch element)
                        pltpu.VMEM((S, D), bf16)],  # V cache
        compiler_params=pltpu.CompilerParams(
            # batch axis parallel (v7x 2-TC sharding); q-tile axis must stay sequential
            # because K/V scratch is filled at qi == 0 and reused by later q tiles.
            dimension_semantics=("parallel", "arbitrary"),
            vmem_limit_bytes=vmem_limit),
    )(x, x, wq, params["bq"], wk, params["bk"], wv, params["bv"],
      wo, params["bo"], w1, params["b1"], w2, params["b2"],
      params["gamma"], params["beta"])


def init_params(key, emb_dim, num_heads, feedforward_dim):
    dh = emb_dim // num_heads
    c_qkv = (6.0 / (emb_dim + dh)) ** 0.5          # per-head SelfAttention init
    c_attn = (6.0 / (num_heads * dh + emb_dim)) ** 0.5
    c_ff = (6.0 / (emb_dim + feedforward_dim)) ** 0.5
    ks = jax.random.split(key, 6)
    f32 = jnp.float32
    params = {
        # heads concatenated along output dim; stored (in, out)
        "wq": jax.random.uniform(ks[0], (emb_dim, emb_dim), f32, -c_qkv, c_qkv),
        "bq": jnp.zeros((1, emb_dim), f32),
        "wk": jax.random.uniform(ks[1], (emb_dim, emb_dim), f32, -c_qkv, c_qkv),
        "bk": jnp.zeros((1, emb_dim), f32),
        "wv": jax.random.uniform(ks[2], (emb_dim, emb_dim), f32, -c_qkv, c_qkv),
        "bv": jnp.zeros((1, emb_dim), f32),
        "wo": jax.random.uniform(ks[3], (emb_dim, emb_dim), f32, -c_attn, c_attn),
        "bo": jnp.zeros((1, emb_dim), f32),
        "w1": jax.random.uniform(ks[4], (emb_dim, feedforward_dim), f32, -c_ff, c_ff),
        "b1": jnp.zeros((1, feedforward_dim), f32),
        "w2": jax.random.uniform(ks[5], (feedforward_dim, emb_dim), f32, -c_ff, c_ff),
        "b2": jnp.zeros((1, emb_dim), f32),
        "gamma": jnp.ones((1, emb_dim), f32),
        "beta": jnp.zeros((1, emb_dim), f32),
    }
    return params


def encoder_block_ref(x, params, *, num_heads, eps=1e-10):
    """Pure-JAX f32 reference mirroring the PyTorch forward exactly."""
    B, S, D = x.shape
    dh = D // num_heads
    q = x @ params["wq"] + params["bq"]
    k = x @ params["wk"] + params["bk"]
    v = x @ params["wv"] + params["bv"]
    outs = []
    for h in range(num_heads):
        qh, kh, vh = (t[..., h * dh:(h + 1) * dh] for t in (q, k, v))
        s = jnp.einsum("bqd,bkd->bqk", qh, kh) / (dh ** 0.5)
        p = jax.nn.softmax(s, axis=-1)
        outs.append(jnp.einsum("bqk,bkd->bqd", p, vh))
    out1 = jnp.concatenate(outs, axis=-1) @ params["wo"] + params["bo"]

    def ln(t):
        mean = jnp.mean(t, axis=-1, keepdims=True)
        std = jnp.sqrt(jnp.mean((t - mean) ** 2, axis=-1, keepdims=True))
        return params["gamma"] * (t - mean) / (std + eps) + params["beta"]

    out2 = ln(out1 + x)
    out3 = jnp.maximum(out2 @ params["w1"] + params["b1"], 0.0) @ params["w2"] + params["b2"]
    return ln(out2 + out3)


if __name__ == "__main__":
    B, S, D = 2, 8, 32
    num_heads = 4
    feedforward_dim = 64

    key = jax.random.PRNGKey(0)
    kx, kp = jax.random.split(key)
    x = jax.random.normal(kx, (B, S, D), jnp.float32)
    params = init_params(kp, D, num_heads, feedforward_dim)

    y = encoder_block(x, params, num_heads=num_heads)
    y = jax.block_until_ready(y)

    y_ref = encoder_block_ref(x, params, num_heads=num_heads)
    assert y.shape == (B, S, D)
    # Tolerance loosened vs the f32 reference: kernel uses bf16 MXU operands (f32
    # accumulation) and approx reciprocals, as requested by the performance review.
    assert jnp.allclose(y, y_ref, atol=5e-2, rtol=5e-2), "mismatch vs JAX reference"

    print("KERNEL_OK")
</pallas_src>

<mosaic_0001>
module attributes {stable_mosaic.version = 11 : i64} {
  func.func @encoder_block_kernel(%arg0: i32, %arg1: i32, %arg2: memref<1x8x32xf32, #tpu.memory_space<vmem>>, %arg3: memref<1x8x32xf32, #tpu.memory_space<vmem>>, %arg4: memref<32x32xbf16, #tpu.memory_space<vmem>>, %arg5: memref<1x32xf32, #tpu.memory_space<vmem>>, %arg6: memref<32x32xbf16, #tpu.memory_space<vmem>>, %arg7: memref<1x32xf32, #tpu.memory_space<vmem>>, %arg8: memref<32x32xbf16, #tpu.memory_space<vmem>>, %arg9: memref<1x32xf32, #tpu.memory_space<vmem>>, %arg10: memref<32x32xbf16, #tpu.memory_space<vmem>>, %arg11: memref<1x32xf32, #tpu.memory_space<vmem>>, %arg12: memref<32x64xbf16, #tpu.memory_space<vmem>>, %arg13: memref<1x64xf32, #tpu.memory_space<vmem>>, %arg14: memref<64x32xbf16, #tpu.memory_space<vmem>>, %arg15: memref<1x32xf32, #tpu.memory_space<vmem>>, %arg16: memref<1x32xf32, #tpu.memory_space<vmem>>, %arg17: memref<1x32xf32, #tpu.memory_space<vmem>>, %arg18: memref<1x8x32xf32, #tpu.memory_space<vmem>>, %arg19: memref<8x32xbf16, #tpu.memory_space<vmem>>, %arg20: memref<8x32xbf16, #tpu.memory_space<vmem>>) attributes {dimension_semantics = [#tpu.dimension_semantics<parallel>, #tpu.dimension_semantics<arbitrary>], iteration_bounds = array<i64: 2, 1>, scalar_prefetch = 0 : i64, scratch_operands = 2 : i64, tpu.core_type = #tpu.core_type<tc>, window_params = [{transform_indices = @transform_0, window_bounds = array<i64: 1, 8, 32>}, {transform_indices = @transform_1, window_bounds = array<i64: 1, 8, 32>}, {pipeline_mode = #tpu.pipeline_mode<synchronous>, transform_indices = @transform_2, window_bounds = array<i64: 32, 32>}, {pipeline_mode = #tpu.pipeline_mode<synchronous>, transform_indices = @transform_3, window_bounds = array<i64: 1, 32>}, {pipeline_mode = #tpu.pipeline_mode<synchronous>, transform_indices = @transform_4, window_bounds = array<i64: 32, 32>}, {pipeline_mode = #tpu.pipeline_mode<synchronous>, transform_indices = @transform_5, window_bounds = array<i64: 1, 32>}, {pipeline_mode = #tpu.pipeline_mode<synchronous>, transform_indices = @transform_6, window_bounds = array<i64: 32, 32>}, {pipeline_mode = #tpu.pipeline_mode<synchronous>, transform_indices = @transform_7, window_bounds = array<i64: 1, 32>}, {pipeline_mode = #tpu.pipeline_mode<synchronous>, transform_indices = @transform_8, window_bounds = array<i64: 32, 32>}, {pipeline_mode = #tpu.pipeline_mode<synchronous>, transform_indices = @transform_9, window_bounds = array<i64: 1, 32>}, {pipeline_mode = #tpu.pipeline_mode<synchronous>, transform_indices = @transform_10, window_bounds = array<i64: 32, 64>}, {pipeline_mode = #tpu.pipeline_mode<synchronous>, transform_indices = @transform_11, window_bounds = array<i64: 1, 64>}, {pipeline_mode = #tpu.pipeline_mode<synchronous>, transform_indices = @transform_12, window_bounds = array<i64: 64, 32>}, {pipeline_mode = #tpu.pipeline_mode<synchronous>, transform_indices = @transform_13, window_bounds = array<i64: 1, 32>}, {pipeline_mode = #tpu.pipeline_mode<synchronous>, transform_indices = @transform_14, window_bounds = array<i64: 1, 32>}, {pipeline_mode = #tpu.pipeline_mode<synchronous>, transform_indices = @transform_15, window_bounds = array<i64: 1, 32>}, {transform_indices = @transform_16, window_bounds = array<i64: 1, 8, 32>}]} {
    %c0_i32 = arith.constant 0 : i32
    %0 = arith.cmpi eq, %arg1, %c0_i32 : i32
    %1 = arith.extui %0 : i1 to i32
    %c0_i32_0 = arith.constant 0 : i32
    %2 = arith.cmpi ne, %1, %c0_i32_0 : i32
    scf.if %2 {
      %c0_65 = arith.constant 0 : index
      %c0_66 = arith.constant 0 : index
      %c0_67 = arith.constant 0 : index
      %168 = vector.load %arg2[%c0_65, %c0_66, %c0_67] : memref<1x8x32xf32, #tpu.memory_space<vmem>>, vector<1x8x32xf32>
      %169 = vector.shape_cast %168 : vector<1x8x32xf32> to vector<8x32xf32>
      %170 = arith.truncf %169 : vector<8x32xf32> to vector<8x32xbf16>
      %c0_68 = arith.constant 0 : index
      %c0_69 = arith.constant 0 : index
      %171 = vector.load %arg6[%c0_68, %c0_69] : memref<32x32xbf16, #tpu.memory_space<vmem>>, vector<32x32xbf16>
      %cst_70 = arith.constant dense<0.000000e+00> : vector<8x32xf32>
      %172 = tpu.matmul %170, %171, %cst_70 {dimension_numbers = #tpu.dot_dimension_numbers<[1], [0], [0], [1], [0, 0, 1, 1], [], []>} : vector<8x32xbf16>, vector<32x32xbf16>, vector<8x32xf32> -> vector<8x32xf32>
      %c0_71 = arith.constant 0 : index
      %c0_72 = arith.constant 0 : index
      %173 = vector.load %arg7[%c0_71, %c0_72] : memref<1x32xf32, #tpu.memory_space<vmem>>, vector<1x32xf32>
      %174 = vector.broadcast %173 : vector<1x32xf32> to vector<8x32xf32>
      %175 = arith.addf %172, %174 : vector<8x32xf32>
      %c0_73 = arith.constant 0 : index
      %c0_74 = arith.constant 0 : index
      %176 = vector.load %arg8[%c0_73, %c0_74] : memref<32x32xbf16, #tpu.memory_space<vmem>>, vector<32x32xbf16>
      %cst_75 = arith.constant dense<0.000000e+00> : vector<8x32xf32>
      %177 = tpu.matmul %170, %176, %cst_75 {dimension_numbers = #tpu.dot_dimension_numbers<[1], [0], [0], [1], [0, 0, 1, 1], [], []>} : vector<8x32xbf16>, vector<32x32xbf16>, vector<8x32xf32> -> vector<8x32xf32>
      %c0_76 = arith.constant 0 : index
      %c0_77 = arith.constant 0 : index
      %178 = vector.load %arg9[%c0_76, %c0_77] : memref<1x32xf32, #tpu.memory_space<vmem>>, vector<1x32xf32>
      %179 = vector.broadcast %178 : vector<1x32xf32> to vector<8x32xf32>
      %180 = arith.addf %177, %179 : vector<8x32xf32>
      %181 = arith.truncf %175 : vector<8x32xf32> to vector<8x32xbf16>
      %c0_78 = arith.constant 0 : index
      %c0_79 = arith.constant 0 : index
      %182 = vector.load %arg19[%c0_78, %c0_79] : memref<8x32xbf16, #tpu.memory_space<vmem>>, vector<8x32xbf16>
      tpu.vector_store %arg19[%c0_78, %c0_79], %181 {strides = array<i32>} : memref<8x32xbf16, #tpu.memory_space<vmem>>, vector<8x32xbf16>,
      %183 = arith.truncf %180 : vector<8x32xf32> to vector<8x32xbf16>
      %c0_80 = arith.constant 0 : index
      %c0_81 = arith.constant 0 : index
      %184 = vector.load %arg20[%c0_80, %c0_81] : memref<8x32xbf16, #tpu.memory_space<vmem>>, vector<8x32xbf16>
      tpu.vector_store %arg20[%c0_80, %c0_81], %183 {strides = array<i32>} : memref<8x32xbf16, #tpu.memory_space<vmem>>, vector<8x32xbf16>,
    } else {
    }
    %c0 = arith.constant 0 : index
    %c0_1 = arith.constant 0 : index
    %c0_2 = arith.constant 0 : index
    %3 = vector.load %arg3[%c0, %c0_1, %c0_2] : memref<1x8x32xf32, #tpu.memory_space<vmem>>, vector<1x8x32xf32>
    %4 = vector.shape_cast %3 : vector<1x8x32xf32> to vector<8x32xf32>
    %5 = arith.truncf %4 : vector<8x32xf32> to vector<8x32xbf16>
    %c0_3 = arith.constant 0 : index
    %c0_4 = arith.constant 0 : index
    %6 = vector.load %arg4[%c0_3, %c0_4] : memref<32x32xbf16, #tpu.memory_space<vmem>>, vector<32x32xbf16>
    %cst = arith.constant dense<0.000000e+00> : vector<8x32xf32>
    %7 = tpu.matmul %5, %6, %cst {dimension_numbers = #tpu.dot_dimension_numbers<[1], [0], [0], [1], [0, 0, 1, 1], [], []>} : vector<8x32xbf16>, vector<32x32xbf16>, vector<8x32xf32> -> vector<8x32xf32>
    %c0_5 = arith.constant 0 : index
    %c0_6 = arith.constant 0 : index
    %8 = vector.load %arg5[%c0_5, %c0_6] : memref<1x32xf32, #tpu.memory_space<vmem>>, vector<1x32xf32>
    %9 = vector.broadcast %8 : vector<1x32xf32> to vector<8x32xf32>
    %10 = arith.addf %7, %9 : vector<8x32xf32>
    %cst_7 = arith.constant 0.353553385 : f32
    %11 = vector.broadcast %cst_7 : f32 to vector<8x32xf32>
    %12 = arith.mulf %10, %11 : vector<8x32xf32>
    %13 = arith.truncf %12 : vector<8x32xf32> to vector<8x32xbf16>
    %c0_8 = arith.constant 0 : index
    %c0_9 = arith.constant 0 : index
    %14 = vector.load %arg19[%c0_8, %c0_9] : memref<8x32xbf16, #tpu.memory_space<vmem>>, vector<8x32xbf16>
    %c0_10 = arith.constant 0 : index
    %c0_11 = arith.constant 0 : index
    %15 = vector.load %arg20[%c0_10, %c0_11] : memref<8x32xbf16, #tpu.memory_space<vmem>>, vector<8x32xbf16>
    %c0_12 = arith.constant 0 : index
    %c0_13 = arith.constant 0 : index
    %16 = vector.load %arg10[%c0_12, %c0_13] : memref<32x32xbf16, #tpu.memory_space<vmem>>, vector<32x32xbf16>
    %cst_14 = arith.constant 0.000000e+00 : f32
    %17 = vector.broadcast %cst_14 : f32 to vector<8x32xf32>
    %18 = vector.extract_strided_slice %13 {offsets = [0, 0], sizes = [8, 8], strides = [1, 1]} : vector<8x32xbf16> to vector<8x8xbf16>
    %19 = vector.extract_strided_slice %14 {offsets = [0, 0], sizes = [8, 8], strides = [1, 1]} : vector<8x32xbf16> to vector<8x8xbf16>
    %20 = vector.extract_strided_slice %15 {offsets = [0, 0], sizes = [8, 8], strides = [1, 1]} : vector<8x32xbf16> to vector<8x8xbf16>
    %cst_15 = arith.constant dense<0.000000e+00> : vector<8x8xf32>
    %21 = tpu.matmul %18, %19, %cst_15 {dimension_numbers = #tpu.dot_dimension_numbers<[1], [1], [0], [0], [0, 0, 1, 0], [], []>} : vector<8x8xbf16>, vector<8x8xbf16>, vector<8x8xf32> -> vector<8x8xf32>
    %cst_16 = arith.constant dense<0xFF800000> : vector<8xf32>
    %22 = vector.multi_reduction <maximumf>, %21, %cst_16 [1] : vector<8x8xf32> to vector<8xf32>
    %23 = vector.shape_cast %22 : vector<8xf32> to vector<8x1xf32>
    %24 = vector.broadcast %23 : vector<8x1xf32> to vector<8x8xf32>
    %25 = arith.subf %21, %24 : vector<8x8xf32>
    %26 = math.exp %25 : vector<8x8xf32>
    %cst_17 = arith.constant dense<0.000000e+00> : vector<8xf32>
    %27 = vector.multi_reduction <add>, %26, %cst_17 [1] : vector<8x8xf32> to vector<8xf32>
    %28 = vector.shape_cast %27 : vector<8xf32> to vector<8x1xf32>
    %29 = tpu.reciprocal %28 {approx = true} : vector<8x1xf32> -> vector<8x1xf32>
    %30 = vector.broadcast %29 : vector<8x1xf32> to vector<8x8xf32>
    %31 = arith.mulf %26, %30 : vector<8x8xf32>
    %32 = arith.truncf %31 : vector<8x8xf32> to vector<8x8xbf16>
    %cst_18 = arith.constant dense<0.000000e+00> : vector<8x8xf32>
    %33 = tpu.matmul %32, %20, %cst_18 {dimension_numbers = #tpu.dot_dimension_numbers<[1], [0], [0], [1], [0, 0, 1, 1], [], []>} : vector<8x8xbf16>, vector<8x8xbf16>, vector<8x8xf32> -> vector<8x8xf32>
    %34 = arith.truncf %33 : vector<8x8xf32> to vector<8x8xbf16>
    %35 = vector.extract_strided_slice %16 {offsets = [0, 0], sizes = [8, 32], strides = [1, 1]} : vector<32x32xbf16> to vector<8x32xbf16>
    %cst_19 = arith.constant dense<0.000000e+00> : vector<8x32xf32>
    %36 = tpu.matmul %34, %35, %cst_19 {dimension_numbers = #tpu.dot_dimension_numbers<[1], [0], [0], [1], [0, 0, 1, 1], [], []>} : vector<8x8xbf16>, vector<8x32xbf16>, vector<8x32xf32> -> vector<8x32xf32>
    %37 = arith.addf %17, %36 : vector<8x32xf32>
    %38 = vector.extract_strided_slice %13 {offsets = [0, 8], sizes = [8, 8], strides = [1, 1]} : vector<8x32xbf16> to vector<8x8xbf16>
    %39 = vector.extract_strided_slice %14 {offsets = [0, 8], sizes = [8, 8], strides = [1, 1]} : vector<8x32xbf16> to vector<8x8xbf16>
    %40 = vector.extract_strided_slice %15 {offsets = [0, 8], sizes = [8, 8], strides = [1, 1]} : vector<8x32xbf16> to vector<8x8xbf16>
    %cst_20 = arith.constant dense<0.000000e+00> : vector<8x8xf32>
    %41 = tpu.matmul %38, %39, %cst_20 {dimension_numbers = #tpu.dot_dimension_numbers<[1], [1], [0], [0], [0, 0, 1, 0], [], []>} : vector<8x8xbf16>, vector<8x8xbf16>, vector<8x8xf32> -> vector<8x8xf32>
    %cst_21 = arith.constant dense<0xFF800000> : vector<8xf32>
    %42 = vector.multi_reduction <maximumf>, %41, %cst_21 [1] : vector<8x8xf32> to vector<8xf32>
    %43 = vector.shape_cast %42 : vector<8xf32> to vector<8x1xf32>
    %44 = vector.broadcast %43 : vector<8x1xf32> to vector<8x8xf32>
    %45 = arith.subf %41, %44 : vector<8x8xf32>
    %46 = math.exp %45 : vector<8x8xf32>
    %cst_22 = arith.constant dense<0.000000e+00> : vector<8xf32>
    %47 = vector.multi_reduction <add>, %46, %cst_22 [1] : vector<8x8xf32> to vector<8xf32>
    %48 = vector.shape_cast %47 : vector<8xf32> to vector<8x1xf32>
    %49 = tpu.reciprocal %48 {approx = true} : vector<8x1xf32> -> vector<8x1xf32>
    %50 = vector.broadcast %49 : vector<8x1xf32> to vector<8x8xf32>
    %51 = arith.mulf %46, %50 : vector<8x8xf32>
    %52 = arith.truncf %51 : vector<8x8xf32> to vector<8x8xbf16>
    %cst_23 = arith.constant dense<0.000000e+00> : vector<8x8xf32>
    %53 = tpu.matmul %52, %40, %cst_23 {dimension_numbers = #tpu.dot_dimension_numbers<[1], [0], [0], [1], [0, 0, 1, 1], [], []>} : vector<8x8xbf16>, vector<8x8xbf16>, vector<8x8xf32> -> vector<8x8xf32>
    %54 = arith.truncf %53 : vector<8x8xf32> to vector<8x8xbf16>
    %55 = vector.extract_strided_slice %16 {offsets = [8, 0], sizes = [8, 32], strides = [1, 1]} : vector<32x32xbf16> to vector<8x32xbf16>
    %cst_24 = arith.constant dense<0.000000e+00> : vector<8x32xf32>
    %56 = tpu.matmul %54, %55, %cst_24 {dimension_numbers = #tpu.dot_dimension_numbers<[1], [0], [0], [1], [0, 0, 1, 1], [], []>} : vector<8x8xbf16>, vector<8x32xbf16>, vector<8x32xf32> -> vector<8x32xf32>
    %57 = arith.addf %37, %56 : vector<8x32xf32>
    %58 = vector.extract_strided_slice %13 {offsets = [0, 16], sizes = [8, 8], strides = [1, 1]} : vector<8x32xbf16> to vector<8x8xbf16>
    %59 = vector.extract_strided_slice %14 {offsets = [0, 16], sizes = [8, 8], strides = [1, 1]} : vector<8x32xbf16> to vector<8x8xbf16>
    %60 = vector.extract_strided_slice %15 {offsets = [0, 16], sizes = [8, 8], strides = [1, 1]} : vector<8x32xbf16> to vector<8x8xbf16>
    %cst_25 = arith.constant dense<0.000000e+00> : vector<8x8xf32>
    %61 = tpu.matmul %58, %59, %cst_25 {dimension_numbers = #tpu.dot_dimension_numbers<[1], [1], [0], [0], [0, 0, 1, 0], [], []>} : vector<8x8xbf16>, vector<8x8xbf16>, vector<8x8xf32> -> vector<8x8xf32>
    %cst_26 = arith.constant dense<0xFF800000> : vector<8xf32>
    %62 = vector.multi_reduction <maximumf>, %61, %cst_26 [1] : vector<8x8xf32> to vector<8xf32>
    %63 = vector.shape_cast %62 : vector<8xf32> to vector<8x1xf32>
    %64 = vector.broadcast %63 : vector<8x1xf32> to vector<8x8xf32>
    %65 = arith.subf %61, %64 : vector<8x8xf32>
    %66 = math.exp %65 : vector<8x8xf32>
    %cst_27 = arith.constant dense<0.000000e+00> : vector<8xf32>
    %67 = vector.multi_reduction <add>, %66, %cst_27 [1] : vector<8x8xf32> to vector<8xf32>
    %68 = vector.shape_cast %67 : vector<8xf32> to vector<8x1xf32>
    %69 = tpu.reciprocal %68 {approx = true} : vector<8x1xf32> -> vector<8x1xf32>
    %70 = vector.broadcast %69 : vector<8x1xf32> to vector<8x8xf32>
    %71 = arith.mulf %66, %70 : vector<8x8xf32>
    %72 = arith.truncf %71 : vector<8x8xf32> to vector<8x8xbf16>
    %cst_28 = arith.constant dense<0.000000e+00> : vector<8x8xf32>
    %73 = tpu.matmul %72, %60, %cst_28 {dimension_numbers = #tpu.dot_dimension_numbers<[1], [0], [0], [1], [0, 0, 1, 1], [], []>} : vector<8x8xbf16>, vector<8x8xbf16>, vector<8x8xf32> -> vector<8x8xf32>
    %74 = arith.truncf %73 : vector<8x8xf32> to vector<8x8xbf16>
    %75 = vector.extract_strided_slice %16 {offsets = [16, 0], sizes = [8, 32], strides = [1, 1]} : vector<32x32xbf16> to vector<8x32xbf16>
    %cst_29 = arith.constant dense<0.000000e+00> : vector<8x32xf32>
    %76 = tpu.matmul %74, %75, %cst_29 {dimension_numbers = #tpu.dot_dimension_numbers<[1], [0], [0], [1], [0, 0, 1, 1], [], []>} : vector<8x8xbf16>, vector<8x32xbf16>, vector<8x32xf32> -> vector<8x32xf32>
    %77 = arith.addf %57, %76 : vector<8x32xf32>
    %78 = vector.extract_strided_slice %13 {offsets = [0, 24], sizes = [8, 8], strides = [1, 1]} : vector<8x32xbf16> to vector<8x8xbf16>
    %79 = vector.extract_strided_slice %14 {offsets = [0, 24], sizes = [8, 8], strides = [1, 1]} : vector<8x32xbf16> to vector<8x8xbf16>
    %80 = vector.extract_strided_slice %15 {offsets = [0, 24], sizes = [8, 8], strides = [1, 1]} : vector<8x32xbf16> to vector<8x8xbf16>
    %cst_30 = arith.constant dense<0.000000e+00> : vector<8x8xf32>
    %81 = tpu.matmul %78, %79, %cst_30 {dimension_numbers = #tpu.dot_dimension_numbers<[1], [1], [0], [0], [0, 0, 1, 0], [], []>} : vector<8x8xbf16>, vector<8x8xbf16>, vector<8x8xf32> -> vector<8x8xf32>
    %cst_31 = arith.constant dense<0xFF800000> : vector<8xf32>
    %82 = vector.multi_reduction <maximumf>, %81, %cst_31 [1] : vector<8x8xf32> to vector<8xf32>
    %83 = vector.shape_cast %82 : vector<8xf32> to vector<8x1xf32>
    %84 = vector.broadcast %83 : vector<8x1xf32> to vector<8x8xf32>
    %85 = arith.subf %81, %84 : vector<8x8xf32>
    %86 = math.exp %85 : vector<8x8xf32>
    %cst_32 = arith.constant dense<0.000000e+00> : vector<8xf32>
    %87 = vector.multi_reduction <add>, %86, %cst_32 [1] : vector<8x8xf32> to vector<8xf32>
    %88 = vector.shape_cast %87 : vector<8xf32> to vector<8x1xf32>
    %89 = tpu.reciprocal %88 {approx = true} : vector<8x1xf32> -> vector<8x1xf32>
    %90 = vector.broadcast %89 : vector<8x1xf32> to vector<8x8xf32>
    %91 = arith.mulf %86, %90 : vector<8x8xf32>
    %92 = arith.truncf %91 : vector<8x8xf32> to vector<8x8xbf16>
    %cst_33 = arith.constant dense<0.000000e+00> : vector<8x8xf32>
    %93 = tpu.matmul %92, %80, %cst_33 {dimension_numbers = #tpu.dot_dimension_numbers<[1], [0], [0], [1], [0, 0, 1, 1], [], []>} : vector<8x8xbf16>, vector<8x8xbf16>, vector<8x8xf32> -> vector<8x8xf32>
    %94 = arith.truncf %93 : vector<8x8xf32> to vector<8x8xbf16>
    %95 = vector.extract_strided_slice %16 {offsets = [24, 0], sizes = [8, 32], strides = [1, 1]} : vector<32x32xbf16> to vector<8x32xbf16>
    %cst_34 = arith.constant dense<0.000000e+00> : vector<8x32xf32>
    %96 = tpu.matmul %94, %95, %cst_34 {dimension_numbers = #tpu.dot_dimension_numbers<[1], [0], [0], [1], [0, 0, 1, 1], [], []>} : vector<8x8xbf16>, vector<8x32xbf16>, vector<8x32xf32> -> vector<8x32xf32>
    %97 = arith.addf %77, %96 : vector<8x32xf32>
    %c0_35 = arith.constant 0 : index
    %c0_36 = arith.constant 0 : index
    %98 = vector.load %arg11[%c0_35, %c0_36] : memref<1x32xf32, #tpu.memory_space<vmem>>, vector<1x32xf32>
    %99 = vector.broadcast %98 : vector<1x32xf32> to vector<8x32xf32>
    %100 = arith.addf %97, %99 : vector<8x32xf32>
    %c0_37 = arith.constant 0 : index
    %c0_38 = arith.constant 0 : index
    %101 = vector.load %arg16[%c0_37, %c0_38] : memref<1x32xf32, #tpu.memory_space<vmem>>, vector<1x32xf32>
    %c0_39 = arith.constant 0 : index
    %c0_40 = arith.constant 0 : index
    %102 = vector.load %arg17[%c0_39, %c0_40] : memref<1x32xf32, #tpu.memory_space<vmem>>, vector<1x32xf32>
    %103 = arith.addf %100, %4 : vector<8x32xf32>
    %cst_41 = arith.constant dense<0.000000e+00> : vector<8xf32>
    %104 = vector.multi_reduction <add>, %103, %cst_41 [1] : vector<8x32xf32> to vector<8xf32>
    %105 = vector.shape_cast %104 : vector<8xf32> to vector<8x1xf32>
    %cst_42 = arith.constant 3.200000e+01 : f32
    %106 = vector.broadcast %cst_42 : f32 to vector<8x1xf32>
    %107 = arith.divf %105, %106 : vector<8x1xf32>
    %108 = vector.broadcast %107 : vector<8x1xf32> to vector<8x32xf32>
    %109 = arith.subf %103, %108 : vector<8x32xf32>
    %110 = arith.mulf %109, %109 : vector<8x32xf32>
    %cst_43 = arith.constant dense<0.000000e+00> : vector<8xf32>
    %111 = vector.multi_reduction <add>, %110, %cst_43 [1] : vector<8x32xf32> to vector<8xf32>
    %112 = vector.shape_cast %111 : vector<8xf32> to vector<8x1xf32>
    %cst_44 = arith.constant 3.200000e+01 : f32
    %113 = vector.broadcast %cst_44 : f32 to vector<8x1xf32>
    %114 = arith.divf %112, %113 : vector<8x1xf32>
    %115 = math.sqrt %114 : vector<8x1xf32>
    %cst_45 = arith.constant 1.000000e-10 : f32
    %116 = vector.broadcast %cst_45 : f32 to vector<8x1xf32>
    %117 = arith.addf %115, %116 : vector<8x1xf32>
    %118 = tpu.reciprocal %117 {approx = true} : vector<8x1xf32> -> vector<8x1xf32>
    %119 = vector.broadcast %107 : vector<8x1xf32> to vector<8x32xf32>
    %120 = arith.subf %103, %119 : vector<8x32xf32>
    %121 = vector.broadcast %101 : vector<1x32xf32> to vector<8x32xf32>
    %122 = arith.mulf %121, %120 : vector<8x32xf32>
    %123 = vector.broadcast %118 : vector<8x1xf32> to vector<8x32xf32>
    %124 = arith.mulf %122, %123 : vector<8x32xf32>
    %125 = vector.broadcast %102 : vector<1x32xf32> to vector<8x32xf32>
    %126 = arith.addf %124, %125 : vector<8x32xf32>
    %127 = arith.truncf %126 : vector<8x32xf32> to vector<8x32xbf16>
    %c0_46 = arith.constant 0 : index
    %c0_47 = arith.constant 0 : index
    %128 = vector.load %arg12[%c0_46, %c0_47] : memref<32x64xbf16, #tpu.memory_space<vmem>>, vector<32x64xbf16>
    %cst_48 = arith.constant dense<0.000000e+00> : vector<8x64xf32>
    %129 = tpu.matmul %127, %128, %cst_48 {dimension_numbers = #tpu.dot_dimension_numbers<[1], [0], [0], [1], [0, 0, 1, 1], [], []>} : vector<8x32xbf16>, vector<32x64xbf16>, vector<8x64xf32> -> vector<8x64xf32>
    %c0_49 = arith.constant 0 : index
    %c0_50 = arith.constant 0 : index
    %130 = vector.load %arg13[%c0_49, %c0_50] : memref<1x64xf32, #tpu.memory_space<vmem>>, vector<1x64xf32>
    %131 = vector.broadcast %130 : vector<1x64xf32> to vector<8x64xf32>
    %132 = arith.addf %129, %131 : vector<8x64xf32>
    %cst_51 = arith.constant 0.000000e+00 : f32
    %133 = vector.broadcast %cst_51 : f32 to vector<8x64xf32>
    %134 = arith.maximumf %132, %133 : vector<8x64xf32>
    %135 = arith.truncf %134 : vector<8x64xf32> to vector<8x64xbf16>
    %c0_52 = arith.constant 0 : index
    %c0_53 = arith.constant 0 : index
    %136 = vector.load %arg14[%c0_52, %c0_53] : memref<64x32xbf16, #tpu.memory_space<vmem>>, vector<64x32xbf16>
    %cst_54 = arith.constant dense<0.000000e+00> : vector<8x32xf32>
    %137 = tpu.matmul %135, %136, %cst_54 {dimension_numbers = #tpu.dot_dimension_numbers<[1], [0], [0], [1], [0, 0, 1, 1], [], []>} : vector<8x64xbf16>, vector<64x32xbf16>, vector<8x32xf32> -> vector<8x32xf32>
    %c0_55 = arith.constant 0 : index
    %c0_56 = arith.constant 0 : index
    %138 = vector.load %arg15[%c0_55, %c0_56] : memref<1x32xf32, #tpu.memory_space<vmem>>, vector<1x32xf32>
    %139 = vector.broadcast %138 : vector<1x32xf32> to vector<8x32xf32>
    %140 = arith.addf %137, %139 : vector<8x32xf32>
    %141 = arith.addf %126, %140 : vector<8x32xf32>
    %cst_57 = arith.constant dense<0.000000e+00> : vector<8xf32>
    %142 = vector.multi_reduction <add>, %141, %cst_57 [1] : vector<8x32xf32> to vector<8xf32>
    %143 = vector.shape_cast %142 : vector<8xf32> to vector<8x1xf32>
    %cst_58 = arith.constant 3.200000e+01 : f32
    %144 = vector.broadcast %cst_58 : f32 to vector<8x1xf32>
    %145 = arith.divf %143, %144 : vector<8x1xf32>
    %146 = vector.broadcast %145 : vector<8x1xf32> to vector<8x32xf32>
    %147 = arith.subf %141, %146 : vector<8x32xf32>
    %148 = arith.mulf %147, %147 : vector<8x32xf32>
    %cst_59 = arith.constant dense<0.000000e+00> : vector<8xf32>
    %149 = vector.multi_reduction <add>, %148, %cst_59 [1] : vector<8x32xf32> to vector<8xf32>
    %150 = vector.shape_cast %149 : vector<8xf32> to vector<8x1xf32>
    %cst_60 = arith.constant 3.200000e+01 : f32
    %151 = vector.broadcast %cst_60 : f32 to vector<8x1xf32>
    %152 = arith.divf %150, %151 : vector<8x1xf32>
    %153 = math.sqrt %152 : vector<8x1xf32>
    %cst_61 = arith.constant 1.000000e-10 : f32
    %154 = vector.broadcast %cst_61 : f32 to vector<8x1xf32>
    %155 = arith.addf %153, %154 : vector<8x1xf32>
    %156 = tpu.reciprocal %155 {approx = true} : vector<8x1xf32> -> vector<8x1xf32>
    %157 = vector.broadcast %145 : vector<8x1xf32> to vector<8x32xf32>
    %158 = arith.subf %141, %157 : vector<8x32xf32>
    %159 = vector.broadcast %101 : vector<1x32xf32> to vector<8x32xf32>
    %160 = arith.mulf %159, %158 : vector<8x32xf32>
    %161 = vector.broadcast %156 : vector<8x1xf32> to vector<8x32xf32>
    %162 = arith.mulf %160, %161 : vector<8x32xf32>
    %163 = vector.broadcast %102 : vector<1x32xf32> to vector<8x32xf32>
    %164 = arith.addf %162, %163 : vector<8x32xf32>
    %c0_62 = arith.constant 0 : index
    %c0_63 = arith.constant 0 : index
    %c0_64 = arith.constant 0 : index
    %165 = vector.load %arg18[%c0_62, %c0_63, %c0_64] : memref<1x8x32xf32, #tpu.memory_space<vmem>>, vector<1x8x32xf32>
    %166 = vector.shape_cast %165 : vector<1x8x32xf32> to vector<8x32xf32>
    %167 = vector.shape_cast %164 : vector<8x32xf32> to vector<1x8x32xf32>
    tpu.vector_store %arg18[%c0_62, %c0_63, %c0_64], %167 {strides = array<i32>} : memref<1x8x32xf32, #tpu.memory_space<vmem>>, vector<1x8x32xf32>,
    return
  }
  func.func @transform_0(%arg0: i32, %arg1: i32) -> (i32, i32, i32) {
    %c0_i32 = arith.constant 0 : i32
    %c0_i32_0 = arith.constant 0 : i32
    %c0_i32_1 = arith.constant 0 : i32
    return %arg0, %c0_i32, %c0_i32_0 : i32, i32, i32
  }
  func.func @transform_1(%arg0: i32, %arg1: i32) -> (i32, i32, i32) {
    %c0_i32 = arith.constant 0 : i32
    %c0_i32_0 = arith.constant 0 : i32
    return %arg0, %arg1, %c0_i32 : i32, i32, i32
  }
  func.func @transform_2(%arg0: i32, %arg1: i32) -> (i32, i32) {
    %c0_i32 = arith.constant 0 : i32
    %c0_i32_0 = arith.constant 0 : i32
    %c0_i32_1 = arith.constant 0 : i32
    return %c0_i32, %c0_i32_0 : i32, i32
  }
  func.func @transform_3(%arg0: i32, %arg1: i32) -> (i32, i32) {
    %c0_i32 = arith.constant 0 : i32
    %c0_i32_0 = arith.constant 0 : i32
    %c0_i32_1 = arith.constant 0 : i32
    return %c0_i32, %c0_i32_0 : i32, i32
  }
  func.func @transform_4(%arg0: i32, %arg1: i32) -> (i32, i32) {
    %c0_i32 = arith.constant 0 : i32
    %c0_i32_0 = arith.constant 0 : i32
    %c0_i32_1 = arith.constant 0 : i32
    return %c0_i32, %c0_i32_0 : i32, i32
  }
  func.func @transform_5(%arg0: i32, %arg1: i32) -> (i32, i32) {
    %c0_i32 = arith.constant 0 : i32
    %c0_i32_0 = arith.constant 0 : i32
    %c0_i32_1 = arith.constant 0 : i32
    return %c0_i32, %c0_i32_0 : i32, i32
  }
  func.func @transform_6(%arg0: i32, %arg1: i32) -> (i32, i32) {
    %c0_i32 = arith.constant 0 : i32
    %c0_i32_0 = arith.constant 0 : i32
    %c0_i32_1 = arith.constant 0 : i32
    return %c0_i32, %c0_i32_0 : i32, i32
  }
  func.func @transform_7(%arg0: i32, %arg1: i32) -> (i32, i32) {
    %c0_i32 = arith.constant 0 : i32
    %c0_i32_0 = arith.constant 0 : i32
    %c0_i32_1 = arith.constant 0 : i32
    return %c0_i32, %c0_i32_0 : i32, i32
  }
  func.func @transform_8(%arg0: i32, %arg1: i32) -> (i32, i32) {
    %c0_i32 = arith.constant 0 : i32
    %c0_i32_0 = arith.constant 0 : i32
    %c0_i32_1 = arith.constant 0 : i32
    return %c0_i32, %c0_i32_0 : i32, i32
  }
  func.func @transform_9(%arg0: i32, %arg1: i32) -> (i32, i32) {
    %c0_i32 = arith.constant 0 : i32
    %c0_i32_0 = arith.constant 0 : i32
    %c0_i32_1 = arith.constant 0 : i32
    return %c0_i32, %c0_i32_0 : i32, i32
  }
  func.func @transform_10(%arg0: i32, %arg1: i32) -> (i32, i32) {
    %c0_i32 = arith.constant 0 : i32
    %c0_i32_0 = arith.constant 0 : i32
    %c0_i32_1 = arith.constant 0 : i32
    return %c0_i32, %c0_i32_0 : i32, i32
  }
  func.func @transform_11(%arg0: i32, %arg1: i32) -> (i32, i32) {
    %c0_i32 = arith.constant 0 : i32
    %c0_i32_0 = arith.constant 0 : i32
    %c0_i32_1 = arith.constant 0 : i32
    return %c0_i32, %c0_i32_0 : i32, i32
  }
  func.func @transform_12(%arg0: i32, %arg1: i32) -> (i32, i32) {
    %c0_i32 = arith.constant 0 : i32
    %c0_i32_0 = arith.constant 0 : i32
    %c0_i32_1 = arith.constant 0 : i32
    return %c0_i32, %c0_i32_0 : i32, i32
  }
  func.func @transform_13(%arg0: i32, %arg1: i32) -> (i32, i32) {
    %c0_i32 = arith.constant 0 : i32
    %c0_i32_0 = arith.constant 0 : i32
    %c0_i32_1 = arith.constant 0 : i32
    return %c0_i32, %c0_i32_0 : i32, i32
  }
  func.func @transform_14(%arg0: i32, %arg1: i32) -> (i32, i32) {
    %c0_i32 = arith.constant 0 : i32
    %c0_i32_0 = arith.constant 0 : i32
    %c0_i32_1 = arith.constant 0 : i32
    return %c0_i32, %c0_i32_0 : i32, i32
  }
  func.func @transform_15(%arg0: i32, %arg1: i32) -> (i32, i32) {
    %c0_i32 = arith.constant 0 : i32
    %c0_i32_0 = arith.constant 0 : i32
    %c0_i32_1 = arith.constant 0 : i32
    return %c0_i32, %c0_i32_0 : i32, i32
  }
  func.func @transform_16(%arg0: i32, %arg1: i32) -> (i32, i32, i32) {
    %c0_i32 = arith.constant 0 : i32
    %c0_i32_0 = arith.constant 0 : i32
    return %arg0, %arg1, %c0_i32 : i32, i32, i32
  }
}

</mosaic_0001>

<bundles_post_ra>
// kernel: tpu_custom_call.1
= control target key start
LH: loop header
LB: loop body
LE: loop exit
PB: predicated region body
PF: predicated region fallthrough
CT: control target
= control target key end

     0   :  { %s2979_s0 = inlined_call_operand.vmem [shape: f32[2,8,32], index: 0, kind: input, shape index: {}]   ;;  %s2980_s1 = inlined_call_operand.vmem [shape: f32[2,8,32], index: 1, kind: input, shape index: {}]   ;;  %s2981_s2 = inlined_call_operand.vmem [shape: bf16[32,32], index: 2, kind: input, shape index: {}]   ;;  %s2982_s3 = inlined_call_operand.vmem [shape: f32[1,32], index: 3, kind: input, shape index: {}]   ;;  %s2983_s4 = inlined_call_operand.hbm [shape: bf16[32,32], index: 4, kind: input, shape index: {}]   ;;  %s2984_s5 = inlined_call_operand.vmem [shape: f32[1,32], index: 5, kind: input, shape index: {}]   ;;  %s2985_s6 = inlined_call_operand.hbm [shape: bf16[32,32], index: 6, kind: input, shape index: {}]   ;;  %s2986_s7 = inlined_call_operand.hbm [shape: f32[1,32], index: 7, kind: input, shape index: {}]   ;;  %s2987_s8 = inlined_call_operand.hbm [shape: bf16[32,32], index: 8, kind: input, shape index: {}]   ;;  %s2988_s9 = inlined_call_operand.hbm [shape: f32[1,32], index: 9, kind: input, shape index: {}]   ;;  %s2989_s10 = inlined_call_operand.vmem [shape: bf16[32,64], index: 10, kind: input, shape index: {}]   ;;  %s2990_s11 = inlined_call_operand.vmem [shape: f32[1,64], index: 11, kind: input, shape index: {}]   ;;  %s2991_s12 = inlined_call_operand.vmem [shape: bf16[64,32], index: 12, kind: input, shape index: {}]   ;;  %s2992_s13 = inlined_call_operand.vmem [shape: f32[1,32], index: 13, kind: input, shape index: {}]   ;;  %s2993_s14 = inlined_call_operand.vmem [shape: f32[1,32], index: 14, kind: input, shape index: {}]   ;;  %s2994_s15 = inlined_call_operand.vmem [shape: f32[1,32], index: 15, kind: input, shape index: {}]   ;;  %s2995_s16 = inlined_call_operand.hbm [shape: f32[2,8,32], index: 16, kind: output, shape index: {}]  }
   0x1   :  { %3011 = sst [smem:[#allocation27_spill]] %s2979_s0 }
   0x2   :  { %3012 = sst [smem:[#allocation28_spill]] %s2985_s6 }
   0x3   :  { %3013 = sst [smem:[#allocation29_spill]] %s2990_s11 }
   0x4   :  { %3014 = sst [smem:[#allocation30_spill]] %s2992_s13 }
   0x5   :  { %3015 = sst [smem:[#allocation31_spill]] %s2994_s15 }
   0x6   :  { %3016 = sst [smem:[#allocation32_spill]] %s2995_s16 }
   0x7   :  { %21 = vsyncpa [#allocation5], 0 }
   0x8   :  { %22 = vsyncpa [#allocation8], 0 }
   0x9   :  { %23 = vsyncpa [#allocation11], 0 }
   0xa   :  { %24 = vsyncpa [#allocation6], 0 }
   0xb   :  { %26 = vsyncpa [#allocation6 + $0x1], 0  ;;  %s2549_s21 = smov 0   ;;  %s2551_s22 = smov 0  }
   0xc   :  { %s2553_s23 = smov 0   ;;  %s2555_s24 = smov 0  }
   0xd   :  { %s2557_s25 = smov 0   ;;  %s2559_s26 = smov 0  }
   0xe LB: > { %3017 = sst [smem:[#allocation18_spill]] %s2429_s21  ;;  %s1850_s27 = sadd.s32 4294967295, %s2449_s26   ;;  %s2449_s26 = sphi %s2559_s26, %s32_s26   ;;  %s2445_s25 = sphi %s2557_s25, %s3051_s25   ;;  %s2441_s24 = sphi %s2555_s24, %s3050_s24   ;;  %s2437_s23 = sphi %s2553_s23, %s3049_s23   ;;  %s2433_s22 = sphi %s2551_s22, %s3048_s22   ;;  %s2429_s21 = sphi %s2549_s21, %s3047_s21  }
   0xf   : > { %3018 = sst [smem:[#allocation19_spill]] %s2433_s22  ;;  %s1851_s28 = sadd.s32 4294967294, %s2449_s26  }
  0x10   : > { %3019 = sst [smem:[#allocation20_spill]] %s2437_s23  ;;  %s44_s29 = sadd.s32 1, %s2445_s25 }
  0x11   : > { %3020 = sst [smem:[#allocation21_spill]] %s2445_s25  ;;  %s401_s30 = sadd.s32 1, %s2437_s23 }
  0x12   : > { %3021 = sst [smem:[#allocation22_spill]] %s2449_s26  ;;  %p46_p0 = scmp.ge.s32.totalorder %s44_s29, 2 }
  0x13   : > { %p411_p1 = scmp.ne.s32.totalorder %s2437_s23, %s2433_s22  ;;  %p412_p2 = scmp.eq.s32.totalorder %s1850_s27, 1 }
  0x14   : > { %p417_p3 = scmp.ne.s32.totalorder %s2433_s22, %s2429_s21  ;;  %s3053_s29 = smov (%p46_p0, %s44_s29), 0 }
  0x15   : > { %3022 = sst [smem:[#allocation23_spill]] %s3053_s29  ;;  %p2589_p4 = por %p412_p2, %p411_p1 }
  0x16   : > { %p418_p5 = scmp.eq.s32.totalorder %s1851_s28, 1  ;;  %s396_s17 = ssub.s32 %s2445_s25, %s3053_s29 }
  0x17   : > { %s3023_s0 = scalar_select %p2589_p4, 1, 0 }
  0x18   : > { %p1852_p6 = scmp.ge.s32.totalorder %s2449_s26, 1  ;;  %p399_p7 = scmp.eq.s32.totalorder %s396_s17, 0 }
  0x19   : > { %3024 = sst [smem:[#allocation24_spill]] %s3023_s0  ;;  %p2596_p8 = por %p418_p5, %p417_p3 }
  0x1a   : > { %p425_p9 = scmp.lt.s32.totalorder %s2449_s26, 3  ;;  %p2608_p11 = scmp.eq.s32.totalorder %s1850_s27, 0 }
  0x1b   : > { %s3025_s18 = scalar_select %p2596_p8, 1, 0 }
  0x1c   : > { %s2602_s19 = scalar_select %p399_p7, %s2437_s23, %s401_s30  }
  0x1d   : > { %3026 = sst [smem:[#allocation25_spill]] %s3025_s18  ;;  %p2604_p10 = pnand %p1852_p6, %p425_p9 }
  0x1e   : > { %3027 = sst [smem:[#allocation26_spill]] %s2602_s19  ;;  %s2451_s28 = smov [#allocation7]  }
  0x1f   : > { %s3028_s20 = scalar_select %p2604_p10, 1, 0 }
  0x20   : > { %s3029_s21 = scalar_select %p2608_p11, 1, 0 }
  0x21   : > { %p2090_p12 = pneg %p2604_p10  ;;  %s459_s17 = sshll.u32 %s2451_s28, 4  ;;  %s460_s17 = int_to_ptr.vmem [resolvable:$true] %s459_s17 }
  0x22   : > { %s2452_s30 = smov [#allocation10]   ;;  %s3031_s6 = sld [smem:[#allocation28_spill]] }
  0x23   : > { %p2616_p13 = pnand %p2608_p11, %p2090_p12  ;;  %s483_s25 = sshll.u32 %s2452_s30, 4  ;;  %s2620_s25 = int_to_ptr.vmem [resolvable:$true] %s483_s25 }
  0x25   : > { %p2630_p1 = pneg %p2616_p13 }
  0x28   : > { %s2219_s23 = scalar_lea.hbm %s3031_s6, 256 }
  0x29   : > { %p2220_p0 = scmp.ne.s32.totalorder %s3031_s6, %s2219_s23  ;;  %p2226_p5 = scmp.lt.u32.totalorder %s2219_s23, %s3031_s6 }
  0x2b   : > { %p2222_p2 = pnand %p2630_p1, %p2220_p0 }
  0x2d   : > { %p2223_p3 = pneg %p2222_p2 }
  0x2f   : > { %p2228_p6 = pnand %p2226_p5, %p2223_p3 }
  0x31   : > { %2231 = shalt.err (!%p2228_p6)
}
  0x32   : > { %s2232_s19 = scalar_lea.vmem %s460_s17, 256  ;;  %p2240_p8 = scmp.lt.s32.totalorder %s460_s17, %s460_s17 }
  0x33   : > { %p2233_p7 = scmp.ne.s32.totalorder %s460_s17, %s2232_s19  ;;  %p2241_p4 = scmp.lt.s32.totalorder %s2232_s19, %s2232_s19 }
  0x35   : > { %p2235_p9 = pnand %p2233_p7, %p2630_p1  ;;  %p2242_p11 = por %p2241_p4, %p2240_p8 }
  0x37   : > { %p2236_p12 = pneg %p2235_p9 }
  0x39   : > { %p2243_p10 = pnand %p2242_p11, %p2236_p12 }
  0x3b   : > { %2246 = shalt.err (!%p2243_p10)
}
  0x3c   : > { %s2453_s26 = smov 64   ;;  %s2454_s18 = smov 4  }
  0x3d   : > { %2096 = dma.hbm_to_vmem [thread:$0]  (!%p2616_p13), %s3031_s6, 256, %s460_s17, [#allocation8], %s2453_s26, %s2453_s26, %s2454_s18  }
  0x3e   : > { %s2247_s0 = scalar_lea.hbm %s2987_s8, 256 }
  0x3f   : > { %p2248_p4 = scmp.ne.s32.totalorder %s2987_s8, %s2247_s0  ;;  %p2254_p11 = scmp.lt.u32.totalorder %s2247_s0, %s2987_s8 }
  0x41   : > { %p2250_p8 = pnand %p2248_p4, %p2630_p1 }
  0x43   : > { %p2251_p10 = pneg %p2250_p8 }
  0x45   : > { %p2256_p0 = pnand %p2254_p11, %p2251_p10 }
  0x47   : > { %2259 = shalt.err (!%p2256_p0)
}
  0x48   : > { %s2260_s17 = scalar_lea.vmem %s2620_s25, 256  ;;  %p2268_p6 = scmp.lt.s32.totalorder %s2620_s25, %s2620_s25 }
  0x49   : > { %p2261_p2 = scmp.ne.s32.totalorder %s2620_s25, %s2260_s17  ;;  %p2269_p7 = scmp.lt.s32.totalorder %s2260_s17, %s2260_s17 }
  0x4b   : > { %p2263_p3 = pnand %p2261_p2, %p2630_p1  ;;  %p2270_p9 = por %p2269_p7, %p2268_p6 }
  0x4d   : > { %p2264_p5 = pneg %p2263_p3 }
  0x4f   : > { %p2271_p12 = pnand %p2270_p9, %p2264_p5 }
  0x51   : > { %2274 = shalt.err (!%p2271_p12)
}
  0x52   : > { %2102 = dma.hbm_to_vmem [thread:$0]  (!%p2616_p13), %s2987_s8, 256, %s2620_s25, [#allocation11], %s2453_s26, %s2453_s26, %s2454_s18  }
  0x53   : > { %s2455_s22 = smov [#allocation4]   ;;  %s2456_s16 = smov [#allocation9]  }
  0x54   : > { %s443_s0 = sshll.u32 %s2455_s22, 4  ;;  %s473_s23 = sshll.u32 %s2456_s16, 4  ;;  %s444_s0 = int_to_ptr.vmem [resolvable:$true] %s443_s0  ;;  %s474_s23 = int_to_ptr.vmem [resolvable:$true] %s473_s23 }
  0x55   : > { %s2275_s19 = scalar_lea.hbm %s2983_s4, 256 }
  0x56   : > { %p2276_p4 = scmp.ne.s32.totalorder %s2983_s4, %s2275_s19  ;;  %p2282_p11 = scmp.lt.u32.totalorder %s2275_s19, %s2983_s4 }
  0x58   : > { %p2278_p8 = pnand %p2276_p4, %p2630_p1 }
  0x5a   : > { %p2279_p10 = pneg %p2278_p8 }
  0x5c   : > { %p2284_p0 = pnand %p2282_p11, %p2279_p10 }
  0x5e   : > { %2287 = shalt.err (!%p2284_p0)
}
  0x5f   : > { %s2288_s25 = scalar_lea.vmem %s444_s0, 256  ;;  %p2296_p6 = scmp.lt.s32.totalorder %s444_s0, %s444_s0 }
  0x60   : > { %p2289_p2 = scmp.ne.s32.totalorder %s444_s0, %s2288_s25  ;;  %p2297_p7 = scmp.lt.s32.totalorder %s2288_s25, %s2288_s25 }
  0x62   : > { %p2291_p3 = pnand %p2289_p2, %p2630_p1  ;;  %p2298_p9 = por %p2297_p7, %p2296_p6 }
  0x64   : > { %p2292_p5 = pneg %p2291_p3 }
  0x66   : > { %p2299_p12 = pnand %p2298_p9, %p2292_p5 }
  0x68   : > { %2302 = shalt.err (!%p2299_p12)
}
  0x69   : > { %2093 = dma.hbm_to_vmem [thread:$0]  (!%p2616_p13), %s2983_s4, 256, %s444_s0, [#allocation5], %s2453_s26, %s2453_s26, %s2454_s18  }
  0x6a   : > { %s2303_s16 = scalar_lea.hbm %s2986_s7, 16 }
  0x6b   : > { %p2304_p4 = scmp.ne.s32.totalorder %s2986_s7, %s2303_s16  ;;  %p2310_p11 = scmp.lt.u32.totalorder %s2303_s16, %s2986_s7 }
  0x6d   : > { %p2306_p8 = pnand %p2304_p4, %p2630_p1 }
  0x6f   : > { %p2307_p10 = pneg %p2306_p8 }
  0x71   : > { %p2312_p0 = pnand %p2310_p11, %p2307_p10 }
  0x73   : > { %2315 = shalt.err (!%p2312_p0)
}
  0x74   : > { %s2316_s11 = scalar_lea.vmem %s474_s23, 16  ;;  %s2323_s26 = scalar_lea.vmem %s474_s23, 32 }
  0x75   : > { %p2317_p2 = scmp.ne.s32.totalorder %s474_s23, %s2316_s11  ;;  %p2324_p6 = scmp.lt.s32.totalorder %s474_s23, %s474_s23 }
  0x76   : > { %p2325_p7 = scmp.lt.s32.totalorder %s2323_s26, %s2316_s11 }
  0x77   : > { %p2319_p3 = pnand %p2317_p2, %p2630_p1 }
  0x78   : > { %p2326_p9 = por %p2325_p7, %p2324_p6 }
  0x79   : > { %p2320_p5 = pneg %p2319_p3 }
  0x7b   : > { %p2327_p12 = pnand %p2326_p9, %p2320_p5 }
  0x7d   : > { %2330 = shalt.err (!%p2327_p12)
}
  0x7e   : > { %2099 = dma.hbm_to_vmem [thread:$0]  (!%p2616_p13), %s2986_s7, 16, %s474_s23, [#allocation8]  }
  0x7f   : > { %s2457_s25 = smov [#allocation12]   ;;  %s2331_s22 = scalar_lea.hbm %s2988_s9, 16 }
  0x80   : > { %s497_s6 = sshll.u32 %s2457_s25, 4  ;;  %p2332_p4 = scmp.ne.s32.totalorder %s2988_s9, %s2331_s22  ;;  %s498_s6 = int_to_ptr.vmem [resolvable:$true] %s497_s6 }
  0x81   : > { %p2338_p11 = scmp.lt.u32.totalorder %s2331_s22, %s2988_s9 }
  0x82   : > { %p2334_p8 = pnand %p2332_p4, %p2630_p1 }
  0x84   : > { %p2335_p10 = pneg %p2334_p8 }
  0x86   : > { %p2340_p0 = pnand %p2338_p11, %p2335_p10 }
  0x88   : > { %2343 = shalt.err (!%p2340_p0)
}
  0x89   : > { %s2344_s23 = scalar_lea.vmem %s498_s6, 16  ;;  %s2351_s17 = scalar_lea.vmem %s498_s6, 32 }
  0x8a   : > { %p2345_p2 = scmp.ne.s32.totalorder %s498_s6, %s2344_s23  ;;  %p2352_p6 = scmp.lt.s32.totalorder %s498_s6, %s498_s6 }
  0x8b   : > { %p2353_p7 = scmp.lt.s32.totalorder %s2351_s17, %s2344_s23 }
  0x8c   : > { %p2347_p3 = pnand %p2345_p2, %p2630_p1 }
  0x8d   : > { %p2354_p9 = por %p2353_p7, %p2352_p6 }
  0x8e   : > { %p2348_p5 = pneg %p2347_p3 }
  0x90   : > { %p2355_p12 = pnand %p2354_p9, %p2348_p5 }
  0x92   : > { %2358 = shalt.err (!%p2355_p12)
}
  0x93   : > { %2105 = dma.hbm_to_vmem [thread:$0]  (!%p2616_p13), %s2988_s9, 16, %s498_s6, [#allocation11]  }
  0x94   : > { %p3033_p4 = scmp.ne.s32.totalorder %s3028_s20, 0 }
  0x95   : > { %p3034_p8 = scmp.ne.s32.totalorder (!%p3033_p4), %s3029_s21, 0 }
  0x96   : > { %545 = sbr.rel (%p3033_p4) target bundleno = 3869 (0xf1d), region = 84 }
  0x9d   : > { %2412 = dma.done.wait (%p3034_p8), [#allocation5], 256  }
  0x9e   : > { %2414 = vsyncadd (%p3034_p8), [#allocation5], 4294967040 }
  0x9f   : > { %2416 = dma.done.wait (%p3034_p8), [#allocation8], 272  }
  0xa0   : > { %2418 = vsyncadd (%p3034_p8), [#allocation8], 4294967024 }
  0xa1   : > { %2420 = dma.done.wait (%p3034_p8), [#allocation11], 272  }
  0xa2   : > { %2422 = vsyncadd (%p3034_p8), [#allocation11], 4294967024  ;;  %p617_p13 = scmp.lt.s32.totalorder %s2441_s24, 1  ;;  %v2458_v0 = vmov 0.0   ;;  %vm2459_vm0 = vmmov 0   ;;  %s3035_s18 = sld [smem:[#allocation27_spill]] }
  0xa3   : > { %1952 = vmatprep.subr.bf16.mxu1 %v2458_v0  ;;  %1956 = vmatprep.mubr.msk.bf16.mxu1 %vm2459_vm0, %v2458_v0  ;;  %v2181_v1 = vld [vmem:[#allocation4] sm:$0xff]   ;;  %v2182_v2 = vld [vmem:[#allocation4 + $0x8] sm:$0xff]   ;;  %v2183_v4 = vld [vmem:[%s2981_s2] sm:$0xff]   ;;  %vm658_vm1 = vcmask 261120   ;;  %vm766_vm2 = vcmask 257024   ;;  %vm847_vm3 = vcmask 64512  }
  0xa4   : > { %s618_s29 = scalar_select %p617_p13, %s2441_s24, 1  ;;  %1968 = vmatprep.subr.bf16.mxu0 %v2458_v0  ;;  %1972 = vmatprep.mubr.msk.bf16.mxu0 %vm2459_vm0, %v2458_v0  ;;  %v2184_v5 = vld [vmem:[%s2981_s2 + $0x8] sm:$0xff]   ;;  %v2185_v9 = vld [vmem:[#allocation7] sm:$0xff]   ;;  %v2186_v10 = vld [vmem:[#allocation7 + $0x8] sm:$0xff]   ;;  %vm909_vm4 = vcmask 1043456   ;;  %vm1634_vm7 = vcmask 523264  }
  0xa5   : > { %1953 = vmatpush3.bf16.msra.mxu1 %v2181_v1  ;;  %1969 = vmatpush3.bf16.msra.mxu0 %v2183_v4  ;;  %v1868_v11 = vld [vmem:[%s2984_s5] ss:$0 sm:$0xff]  ;;  %s2460_s11 = smov 120   ;;  %v1872_v29 = vld [vmem:[#allocation9] ss:$0 sm:$0xff]  ;;  %s2461_s26 = smov 112  }
  0xa6   : > { %s1866_s20 = sshll.u32 %s618_s29, 3  ;;  %1954 = vmatprep.subr.bf16.mxu1 %v2458_v0  ;;  %1970 = vmatprep.subr.bf16.mxu0 %v2458_v0  ;;  %v1876_v21 = vld [vmem:[%s2982_s3] ss:$0 sm:$0xff]  ;;  %s2462_s29 = smov 104  }
  0xa7   : > { %s627_s15 = scalar_lea.vmem %s2980_s1, %s1866_s20  ;;  %s3036_s30 = sld [smem:[#allocation31_spill]] }
  0xa8   : > { %s620_s0 = scalar_lea.vmem %s3035_s18, %s1866_s20  ;;  %v2767_v6 = vld [vmem:[%s627_s15] sm:$0xff]  ;;  %s3037_s20 = sld [smem:[#allocation29_spill]] }
  0xa9   : > { %v633_v3 = vld [vmem:[%s620_s0] sm:$0xff]  ;;  %1955 = vmatpush3.bf16.msra.mxu1 %v2182_v2  ;;  %v771_v8 = vpack.c.bf16 %v2767_v6, %v2767_v6  ;;  %1971 = vmatpush3.bf16.msra.mxu0 %v2184_v5  ;;  %s3038_s18 = sld [smem:[#allocation30_spill]]  ;;  %s3039_s0 = sld [smem:[#allocation19_spill]] }
  0xaa   : > { %v634_v7 = vpack.c.bf16 %v633_v3, %v633_v3  ;;  %1960 = vmatprep.subr.bf16.mxu1 %v2458_v0  ;;  %1982 = vmatprep.subr.bf16.mxu0 %v2458_v0  ;;  %v844_v3 = vld [vmem:[#allocation10 + $0x4] sm:$0xf]  ;;  %s3040_s25 = sld [smem:[#allocation24_spill]]  ;;  %s1908_s13 = sshll.u32 %s2441_s24, 7 }
  0xab   : > { %v1076_v4 = vsel %vm909_vm4, %v844_v3, 0  ;;  %s3041_s19 = sld [smem:[#allocation32_spill]]  ;;  %s2463_s24 = smov [#allocation13]  }
  0xac   : > { %1957 = vmatmul.mubr.msk.bf16.vlgmr.msra.gmra.mrb[0].mxu1 %vm658_vm1, %v634_v7  ;;  %1973 = vmatmul.mubr.msk.bf16.vlgmr.msra.gmra.mrb[0].mxu0 %vm658_vm1, %v771_v8 }
  0xad   : > { %1964 = vmatprep.mubr.msk.bf16.mxu1 %vm2459_vm0, %v2458_v0  ;;  %1984 = vmatprep.mubr.msk.bf16.mxu0 %vm2459_vm0, %v2458_v0 }
  0xae   : > { %1961 = vmatpush3.bf16.msra.mxu1 %v2185_v9 }
  0xaf   : > { %1962 = vmatprep.subr.bf16.mxu1 %v2458_v0  ;;  %s614_s6 = sand.u32 1, %s3039_s0  }
  0xb0   : > { %s1865_s15 = sshll.u32 %s614_s6, 3  ;;  %s1703_s17 = scalar_lea.sflag [#allocation6], %s614_s6 }
  0xb1   : > { %s616_s22 = scalar_lea.vmem [#allocation13], %s1865_s15  ;;  %s2931_s23 = scalar_lea.hbm %s3041_s19, %s1908_s13 }
  0xb2   : > { %1963 = vmatpush3.bf16.msra.mxu1 %v2186_v10  ;;  %v843_v10 = vld [vmem:[#allocation10] sm:$0xf]  ;;  %s1717_s16 = sshll.u32 %s616_s22, 4  ;;  %p3042_p10 = scmp.ne.s32.totalorder %s3040_s25, 0  ;;  %s2933_s16 = int_to_ptr.vmem [resolvable:$true] %s1717_s16 }
  0xb3   : > { %1976 = vmatprep.subr.bf16.mxu1 %v2458_v0 }
  0xb5   : > { %1965 = vmatmul.mubr.msk.bf16.vlgmr.msra.gmra.mrb[4].mxu1 %vm658_vm1, %v634_v7 }
  0xb6   : > { %1978 = vmatprep.mubr.msk.bf16.mxu1 %vm2459_vm0, %v2458_v0 }
 0x17f   : > { %v696_v12 = vpop.f32.mrb[0].mxu1  ;;  %v833_v18 = vpop.f32.mrb[0].mxu0 }
 0x180   : > { %v697_v13 = vadd.f32 %v1868_v11, %v696_v12  ;;  %v1958_v14 = vpop.f32.mrb[1].mxu1  ;;  %v1974_v19 = vpop.f32.mrb[1].mxu0  ;;  %v834_v23 = vadd.f32 %v1876_v21, %v833_v18 }
 0x181   : > { %v699_v15 = vpop.f32.mrb[2].mxu1  ;;  %v836_v20 = vpop.f32.mrb[2].mxu0 }
 0x182   : > { %v765_v16 = vpack.c.bf16 %v697_v13, %v697_v13  ;;  %v1959_v17 = vpop.f32.mrb[3].mxu1  ;;  %v1975_v22 = vpop.f32.mrb[3].mxu0  ;;  %v839_v25 = vmul.f32 0.35355338, %v834_v23  ;;  %v1122_v13 = vsel %vm909_vm4, %v843_v10, 0 }
 0x184   : > { %767 = vst.msk [vmem:[#allocation2] sm:$0xf] %vm766_vm2, %v765_v16  ;;  %v2798_v28 = vpack.c.bf16 %v839_v25, %v839_v25 }
 0x188   : > { %v759_v30 = vpop.f32.mrb[4].mxu1 }
 0x189   : > { %v760_v31 = vadd.f32 %v1872_v29, %v759_v30  ;;  %v1966_v32 = vpop.f32.mrb[5].mxu1 }
 0x18a   : > { %v762_v33 = vpop.f32.mrb[6].mxu1 }
 0x18b   : > { %v841_v24 = vld [vmem:[#allocation2] sm:$0xf]  ;;  %v768_v34 = vpack.c.bf16 %v760_v31, %v760_v31  ;;  %v1967_v35 = vpop.f32.mrb[7].mxu1 }
 0x18c   : > { %v852_v26 = vsel %vm847_vm3, %v841_v24, 0  ;;  %v2793_v27 = vcombine.low %v841_v24, %v841_v24 }
 0x18d   : > { %1977 = vmatpush3.bf16.xpose.msra.mxu1 %v852_v26  ;;  %769 = vst.msk [vmem:[#allocation3] sm:$0xf] %vm766_vm2, %v768_v34 }
 0x18e   : > { %960 = vrot.lane.b32.xlu0 %v2793_v27, %s2460_s11  ;;  %1988 = vmatprep.subr.bf16.mxu1 %v2458_v0 }
 0x192   : > { %955 = vrot.lane.b32.xlu0 %v2798_v28, %s2460_s11 }
 0x194   : > { %1979 = vmatmul.mubr.msk.bf16.vlgmr.msra.gmra.mrb[8].mxu1 %vm847_vm3, %v2798_v28  ;;  %v842_v36 = vld [vmem:[#allocation3] sm:$0xf] }
 0x195   : > { %1990 = vmatprep.mubr.msk.bf16.mxu1 %vm2459_vm0, %v2458_v0  ;;  %v911_v37 = vsel %vm909_vm4, %v842_v36, 0  ;;  %v2817_v56 = vcombine.low %v842_v36, %v842_v36 }
 0x196   : > { %1983 = vmatpush3.bf16.msra.mxu0 %v911_v37 }
 0x197   : > { %1994 = vmatprep.subr.bf16.mxu0 %v2458_v0 }
 0x200   : > { %v961_v38 = vpop.permute.xlu0 %960 }
 0x201   : > { %v966_v39 = vsel %vm847_vm3, %v961_v38, 0 }
 0x202   : > { %1989 = vmatpush3.bf16.xpose.msra.mxu1 %v966_v39 }
 0x203   : > { %2000 = vmatprep.subr.bf16.mxu1 %v2458_v0 }
 0x204   : > { %v956_v40 = vpop.permute.xlu0 %955 }
 0x209   : > { %1991 = vmatmul.mubr.msk.bf16.vlgmr.msra.gmra.mrb[12].mxu1 %vm847_vm3, %v956_v40 }
 0x20a   : > { %2002 = vmatprep.mubr.msk.bf16.mxu1 %vm2459_vm0, %v2458_v0  ;;  %2001 = vmatpush3.bf16.msra.mxu1 %v1076_v4 }
 0x20b   : > { %2012 = vmatprep.subr.bf16.mxu1 %v2458_v0 }
 0x267   : > { %v888_v41 = vpop.f32.mrb[8].mxu1 }
 0x268   : > { %v1980_v42 = vpop.f32.mrb[9].mxu1  ;;  %v894_v43 = vsel %vm847_vm3, %v888_v41, -inf }
 0x269   : > { %895 = vmax.xlane.f32.xlu1 %v894_v43  ;;  %v891_v44 = vpop.f32.mrb[10].mxu1 }
 0x26a   : > { %v1981_v45 = vpop.f32.mrb[11].mxu1 }
 0x2dc   : > { %v1002_v46 = vpop.f32.mrb[12].mxu1 }
 0x2dd   : > { %v1992_v47 = vpop.f32.mrb[13].mxu1  ;;  %v1008_v48 = vsel %vm847_vm3, %v1002_v46, -inf }
 0x2de   : > { %1009 = vmax.xlane.f32.xlu1 %v1008_v48  ;;  %v1005_v49 = vpop.f32.mrb[14].mxu1 }
 0x2df   : > { %v1993_v50 = vpop.f32.mrb[15].mxu1 }
 0x2f6   : > { %v896_v51 = vpop.xlane.xlu1 %895 }
 0x2f7   : > { %v897_v52 = vsub.f32 %v888_v41, %v896_v51 }
 0x2f9   : > { %v898_v53 = vmul.f32 1.442695, %v897_v52 }
 0x2fb   : > { %2195 = vpow2.f32 %v898_v53 }
 0x305   : > { %v2196_v54 = vpop.eup %2195 }
 0x306   : > { %v900_v55 = vsel %vm847_vm3, %v2196_v54, 0.0 }
 0x307   : > { %901 = vadd.xlane.f32.xlu0 %v900_v55 }
 0x31d   : > { %1226 = vrot.lane.b32.xlu0 %v2817_v56, %s2461_s26 }
 0x36b   : > { %v1010_v57 = vpop.xlane.xlu1 %1009 }
 0x36c   : > { %v1011_v58 = vsub.f32 %v1002_v46, %v1010_v57 }
 0x36e   : > { %v1012_v59 = vmul.f32 1.442695, %v1011_v58 }
 0x370   : > { %2197 = vpow2.f32 %v1012_v59 }
 0x37a   : > { %v2198_v60 = vpop.eup %2197 }
 0x37b   : > { %v1014_v61 = vsel %vm847_vm3, %v2198_v60, 0.0 }
 0x37c   : > { %1015 = vadd.xlane.f32.xlu1 %v1014_v61 }
 0x38d   : > { %1023 = vrot.lane.b32.xlu1 %v2817_v56, %s2460_s11  ;;  %s2359_s11 = scalar_lea.vmem %s2933_s16, 128 }
 0x38e   : > { %p2360_p1 = scmp.ne.s32.totalorder %s2933_s16, %s2359_s11 }
 0x390   : > { %p2361_p11 = pnand %p2360_p1, %p3042_p10 }
 0x391   : > { %1166 = vrot.lane.b32.xlu1 %v2793_v27, %s2461_s26 }
 0x392   : > { %p2362_p0 = pneg %p2361_p11 }
 0x394   : > { %v902_v62 = vpop.xlane.xlu0 %901 }
 0x395   : > { %2199 = vrcp.f32 %v902_v62  ;;  %1164 = vrot.lane.b32.xlu1 %v2798_v28, %s2461_s26  ;;  %s2363_s26 = sshll.u32 %s2463_s24, 4  ;;  %s2364_s26 = int_to_ptr.vmem [resolvable:$false] %s2363_s26 }
 0x396   : > { %p2366_p2 = scmp.lt.s32.totalorder %s2933_s16, %s2364_s26 }
 0x398   : > { %v1227_v14 = vpop.permute.xlu0 %1226 }
 0x399   : > { %v1232_v19 = vsel %vm909_vm4, %v1227_v14, 0 }
 0x39f   : > { %v2200_v63 = vpop.eup %2199 }
 0x3a0   : > { %v904_v1 = vmul.f32 %v2200_v63, %v2196_v54 }
 0x3a2   : > { %v905_v2 = vpack.c.bf16 %v904_v1, %v904_v1 }
 0x3a4   : > { %1985 = vmatmul.mubr.msk.bf16.vlgmr.msra.gmra.mrb[4].mxu0 %vm847_vm3, %v905_v2 }
 0x3a5   : > { %1996 = vmatprep.mubr.msk.bf16.mxu0 %vm2459_vm0, %v2458_v0 }
 0x409   : > { %v1016_v5 = vpop.xlane.xlu1 %1015 }
 0x40a   : > { %2201 = vrcp.f32 %v1016_v5 }
 0x40d   : > { %v1024_v7 = vpop.permute.xlu1 %1023 }
 0x40e   : > { %v1029_v8 = vsel %vm909_vm4, %v1024_v7, 0 }
 0x40f   : > { %1995 = vmatpush3.bf16.msra.mxu0 %v1029_v8 }
 0x410   : > { %2006 = vmatprep.subr.bf16.mxu0 %v2458_v0 }
 0x411   : > { %v1167_v21 = vpop.permute.xlu1 %1166 }
 0x412   : > { %v1172_v26 = vsel %vm847_vm3, %v1167_v21, 0 }
 0x414   : > { %v2202_v9 = vpop.eup %2201 }
 0x415   : > { %v1018_v11 = vmul.f32 %v2202_v9, %v2198_v60  ;;  %v1165_v30 = vpop.permute.xlu1 %1164 }
 0x417   : > { %v1019_v12 = vpack.c.bf16 %v1018_v11, %v1018_v11  ;;  %v846_v11 = vld [vmem:[#allocation10 + $0xc] sm:$0xf] }
 0x419   : > { %1997 = vmatmul.mubr.msk.bf16.vlgmr.msra.gmra.mrb[8].mxu0 %vm847_vm3, %v1019_v12  ;;  %v1437_v12 = vsel %vm909_vm4, %v846_v11, 0 }
 0x41a   : > { %2007 = vmatpush3.bf16.msra.mxu0 %v1122_v13  ;;  %2008 = vmatprep.mubr.msk.bf16.mxu0 %vm2459_vm0, %v2458_v0 }
 0x41b   : > { %2018 = vmatprep.subr.bf16.mxu0 %v2458_v0 }
 0x477   : > { %v947_v15 = vpop.f32.mrb[4].mxu0 }
 0x478   : > { %v953_v16 = vpack.c.bf16 %v947_v15, %v947_v15  ;;  %v1986_v17 = vpop.f32.mrb[5].mxu0 }
 0x479   : > { %v950_v18 = vpop.f32.mrb[6].mxu0 }
 0x47a   : > { %v1987_v20 = vpop.f32.mrb[7].mxu0  ;;  %2009 = vmatmul.mubr.msk.bf16.vlgmr.msra.gmra.mrb[12].mxu0 %vm847_vm3, %v953_v16 }
 0x47b   : > { %2019 = vmatpush3.bf16.msra.mxu0 %v1232_v19  ;;  %2020 = vmatprep.mubr.msk.bf16.mxu0 %vm2459_vm0, %v2458_v0 }
 0x47c   : > { %2030 = vmatprep.subr.bf16.mxu0 %v2458_v0 }
 0x4ec   : > { %v1065_v22 = vpop.f32.mrb[8].mxu0 }
 0x4ed   : > { %v1071_v23 = vpack.c.bf16 %v1065_v22, %v1065_v22  ;;  %v1998_v24 = vpop.f32.mrb[9].mxu0 }
 0x4ee   : > { %v1068_v25 = vpop.f32.mrb[10].mxu0 }
 0x4ef   : > { %v1999_v29 = vpop.f32.mrb[11].mxu0  ;;  %2003 = vmatmul.mubr.msk.bf16.vlgmr.msra.gmra.mrb[16].mxu1 %vm847_vm3, %v1071_v23 }
 0x4f0   : > { %2013 = vmatpush3.bf16.xpose.msra.mxu1 %v1172_v26  ;;  %2014 = vmatprep.mubr.msk.bf16.mxu1 %vm2459_vm0, %v2458_v0 }
 0x4f1   : > { %2024 = vmatprep.subr.bf16.mxu1 %v2458_v0 }
 0x4f7   : > { %2015 = vmatmul.mubr.msk.bf16.vlgmr.msra.gmra.mrb[20].mxu1 %vm847_vm3, %v1165_v30 }
 0x4f8   : > { %2026 = vmatprep.mubr.msk.bf16.mxu1 %vm2459_vm0, %v2458_v0 }
 0x54d   : > { %v1158_v31 = vpop.f32.mrb[12].mxu0 }
 0x54e   : > { %v2010_v32 = vpop.f32.mrb[13].mxu0 }
 0x54f   : > { %v1161_v33 = vpop.f32.mrb[14].mxu0 }
 0x550   : > { %v2011_v34 = vpop.f32.mrb[15].mxu0 }
 0x5c2   : > { %v1112_v35 = vpop.f32.mrb[16].mxu1 }
 0x5c3   : > { %v2850_v36 = vadd.f32 %v1158_v31, %v1112_v35  ;;  %v2004_v37 = vpop.f32.mrb[17].mxu1  ;;  %v1894_v31 = vld [vmem:[#allocation12] ss:$0 sm:$0xff] }
 0x5c4   : > { %v1115_v38 = vpop.f32.mrb[18].mxu1 }
 0x5c5   : > { %v2005_v39 = vpop.f32.mrb[19].mxu1 }
 0x5ca   : > { %v1208_v40 = vpop.f32.mrb[20].mxu1 }
 0x5cb   : > { %v2016_v41 = vpop.f32.mrb[21].mxu1  ;;  %v1214_v42 = vsel %vm847_vm3, %v1208_v40, -inf }
 0x5cc   : > { %1215 = vmax.xlane.f32.xlu1 %v1214_v42  ;;  %v1211_v43 = vpop.f32.mrb[22].mxu1 }
 0x5cd   : > { %v2017_v44 = vpop.f32.mrb[23].mxu1 }
 0x5ce   : > { %v2189_v44 = vld [vmem:[%s2989_s10] sm:$0xff]  }
 0x659   : > { %v1216_v45 = vpop.xlane.xlu1 %1215 }
 0x65a   : > { %v1217_v46 = vsub.f32 %v1208_v40, %v1216_v45  ;;  %v2190_v45 = vld [vmem:[%s2989_s10 + $0x8] sm:$0xff]  }
 0x65c   : > { %v1218_v47 = vmul.f32 1.442695, %v1217_v46  ;;  %v2192_v46 = vld [vmem:[%s2991_s12 + $0x8] sm:$0xff]  }
 0x65e   : > { %2203 = vpow2.f32 %v1218_v47 }
 0x668   : > { %v2204_v48 = vpop.eup %2203 }
 0x669   : > { %v1220_v49 = vsel %vm847_vm3, %v2204_v48, 0.0 }
 0x66a   : > { %1221 = vadd.xlane.f32.xlu0 %v1220_v49 }
 0x680   : > { %1324 = vrot.lane.b32.xlu0 %v2793_v27, %s2462_s29 }
 0x684   : > { %1322 = vrot.lane.b32.xlu0 %v2798_v28, %s2462_s29  ;;  %v845_v28 = vld [vmem:[#allocation10 + $0x8] sm:$0xf] }
 0x685   : > { %v1279_v57 = vsel %vm909_vm4, %v845_v28, 0 }
 0x686   : > { %2025 = vmatpush3.bf16.msra.mxu1 %v1279_v57  ;;  %v1896_v57 = vld [vmem:[%s3036_s30] ss:$0 sm:$0xff] }
 0x687   : > { %2036 = vmatprep.subr.bf16.mxu1 %v2458_v0 }
 0x6f7   : > { %v1222_v50 = vpop.xlane.xlu0 %1221 }
 0x6f8   : > { %2205 = vrcp.f32 %v1222_v50 }
 0x6fb   : > { %v1325_v53 = vpop.permute.xlu0 %1324 }
 0x6fc   : > { %v1330_v55 = vsel %vm847_vm3, %v1325_v53, 0 }
 0x6ff   : > { %v1323_v27 = vpop.permute.xlu0 %1322 }
 0x702   : > { %v2206_v51 = vpop.eup %2205 }
 0x703   : > { %v1224_v52 = vmul.f32 %v2206_v51, %v2204_v48 }
 0x705   : > { %v1225_v54 = vpack.c.bf16 %v1224_v52, %v1224_v52 }
 0x707   : > { %2021 = vmatmul.mubr.msk.bf16.vlgmr.msra.gmra.mrb[16].mxu0 %vm847_vm3, %v1225_v54 }
 0x708   : > { %2031 = vmatpush3.bf16.xpose.msra.mxu0 %v1330_v55  ;;  %2032 = vmatprep.mubr.msk.bf16.mxu0 %vm2459_vm0, %v2458_v0  ;;  %v1895_v55 = vld [vmem:[%s2993_s14] ss:$0 sm:$0xff] }
 0x709   : > { %2042 = vmatprep.subr.bf16.mxu0 %v2458_v0 }
 0x70f   : > { %2033 = vmatmul.mubr.msk.bf16.vlgmr.msra.gmra.mrb[20].mxu0 %vm847_vm3, %v1323_v27 }
 0x710   : > { %2044 = vmatprep.mubr.msk.bf16.mxu0 %vm2459_vm0, %v2458_v0  ;;  %2043 = vmatpush3.bf16.msra.mxu0 %v1437_v12 }
 0x711   : > { %2056 = vmatprep.subr.bf16.mxu0 %v2458_v0 }
 0x7da   : > { %v1268_v58 = vpop.f32.mrb[16].mxu0 }
 0x7db   : > { %v1274_v59 = vpack.c.bf16 %v1268_v58, %v1268_v58  ;;  %v2022_v60 = vpop.f32.mrb[17].mxu0 }
 0x7dc   : > { %v1271_v61 = vpop.f32.mrb[18].mxu0 }
 0x7dd   : > { %v2023_v62 = vpop.f32.mrb[19].mxu0  ;;  %2027 = vmatmul.mubr.msk.bf16.vlgmr.msra.gmra.mrb[24].mxu1 %vm847_vm3, %v1274_v59  ;;  %v2193_v61 = vld [vmem:[%s2991_s12 + $0x10] sm:$0xff]  }
 0x7de   : > { %2038 = vmatprep.mubr.msk.bf16.mxu1 %vm2459_vm0, %v2458_v0  ;;  %v2194_v62 = vld [vmem:[%s2991_s12 + $0x18] sm:$0xff]  }
 0x7e2   : > { %v1366_v63 = vpop.f32.mrb[20].mxu0 }
 0x7e3   : > { %v2034_v1 = vpop.f32.mrb[21].mxu0  ;;  %v1372_v2 = vsel %vm847_vm3, %v1366_v63, -inf }
 0x7e4   : > { %1373 = vmax.xlane.f32.xlu0 %v1372_v2  ;;  %v1369_v3 = vpop.f32.mrb[22].mxu0 }
 0x7e5   : > { %v2035_v4 = vpop.f32.mrb[23].mxu0 }
 0x871   : > { %v1374_v5 = vpop.xlane.xlu0 %1373 }
 0x872   : > { %v1375_v7 = vsub.f32 %v1366_v63, %v1374_v5  ;;  %v1897_v63 = vld [vmem:[%s3037_s20] ss:$0 sm:$0xff] }
 0x874   : > { %v1376_v8 = vmul.f32 1.442695, %v1375_v7 }
 0x876   : > { %2207 = vpow2.f32 %v1376_v8 }
 0x880   : > { %v2208_v9 = vpop.eup %2207 }
 0x881   : > { %v1378_v10 = vsel %vm847_vm3, %v2208_v9, 0.0 }
 0x882   : > { %1379 = vadd.xlane.f32.xlu1 %v1378_v10 }
 0x893   : > { %1384 = vrot.lane.b32.xlu1 %v2817_v56, %s2462_s29  ;;  %s2365_s29 = scalar_lea.vmem %s2364_s26, 256 }
 0x894   : > { %p2367_p3 = scmp.lt.s32.totalorder %s2365_s29, %s2359_s11 }
 0x896   : > { %p2368_p5 = por %p2367_p3, %p2366_p2 }
 0x898   : > { %p2369_p6 = pnand %p2368_p5, %p2362_p0 }
 0x8b0   : > { %v1315_v13 = vpop.f32.mrb[24].mxu1 }
 0x8b1   : > { %v1321_v14 = vadd.f32 %v1315_v13, %v2850_v36  ;;  %v2028_v15 = vpop.f32.mrb[25].mxu1 }
 0x8b2   : > { %v1318_v16 = vpop.f32.mrb[26].mxu1 }
 0x8b3   : > { %v2029_v17 = vpop.f32.mrb[27].mxu1 }
 0x90f   : > { %v1380_v18 = vpop.xlane.xlu1 %1379 }
 0x910   : > { %2209 = vrcp.f32 %v1380_v18 }
 0x913   : > { %v1385_v19 = vpop.permute.xlu1 %1384 }
 0x914   : > { %v1390_v20 = vsel %vm909_vm4, %v1385_v19, 0 }
 0x915   : > { %2037 = vmatpush3.bf16.msra.mxu1 %v1390_v20 }
 0x916   : > { %2048 = vmatprep.subr.bf16.mxu1 %v2458_v0 }
 0x91a   : > { %v2210_v56 = vpop.eup %2209 }
 0x91b   : > { %v1382_v21 = vmul.f32 %v2210_v56, %v2208_v9 }
 0x91d   : > { %v1383_v22 = vpack.c.bf16 %v1382_v21, %v1382_v21 }
 0x91f   : > { %2039 = vmatmul.mubr.msk.bf16.vlgmr.msra.gmra.mrb[28].mxu1 %vm847_vm3, %v1383_v22 }
 0x920   : > { %2052 = vmatprep.mubr.msk.bf16.mxu1 %vm2459_vm0, %v2458_v0  ;;  %2049 = vmatpush3.bf16.msra.mxu1 %v2189_v44 }
 0x921   : > { %2050 = vmatprep.subr.bf16.mxu1 %v2458_v0 }
 0x924   : > { %2051 = vmatpush3.bf16.msra.mxu1 %v2190_v45 }
 0x9f2   : > { %v1426_v23 = vpop.f32.mrb[28].mxu1 }
 0x9f3   : > { %v1432_v24 = vpack.c.bf16 %v1426_v23, %v1426_v23  ;;  %v2040_v25 = vpop.f32.mrb[29].mxu1 }
 0x9f4   : > { %v1429_v26 = vpop.f32.mrb[30].mxu1 }
 0x9f5   : > { %v2041_v29 = vpop.f32.mrb[31].mxu1  ;;  %2045 = vmatmul.mubr.msk.bf16.vlgmr.msra.gmra.mrb[24].mxu0 %vm847_vm3, %v1432_v24 }
 0x9f6   : > { %2064 = vmatprep.mubr.msk.bf16.mxu0 %vm2459_vm0, %v2458_v0 }
 0xac8   : > { %v1473_v30 = vpop.f32.mrb[24].mxu0 }
 0xac9   : > { %v1479_v32 = vadd.f32 %v1473_v30, %v1321_v14  ;;  %v2046_v33 = vpop.f32.mrb[25].mxu0 }
 0xaca   : > { %v1476_v34 = vpop.f32.mrb[26].mxu0 }
 0xacb   : > { %v1487_v35 = vadd.f32 %v1894_v31, %v1479_v32  ;;  %v2047_v36 = vpop.f32.mrb[27].mxu0 }
 0xacd   : > { %v1490_v37 = vadd.f32 %v1487_v35, %v2767_v6  ;;  %v2191_v6 = vld [vmem:[%s2991_s12] sm:$0xff]  }
 0xace   : > { %2057 = vmatpush3.bf16.msra.mxu0 %v2191_v6 }
 0xacf   : > { %v1491_v38 = vsel %vm658_vm1, %v1490_v37, 0.0  ;;  %2058 = vmatprep.subr.bf16.mxu0 %v2458_v0 }
 0xad0   : > { %1492 = vadd.xlane.f32.xlu1 %v1491_v38 }
 0xad2   : > { %2059 = vmatpush3.bf16.msra.mxu0 %v2192_v46 }
 0xad3   : > { %2060 = vmatprep.subr.bf16.mxu0 %v2458_v0 }
 0xad6   : > { %2061 = vmatpush3.bf16.msra.mxu0 %v2193_v61 }
 0xad7   : > { %2062 = vmatprep.subr.bf16.mxu0 %v2458_v0  ;;  %v1901_v0 = vld [vmem:[%s3038_s18] ss:$0 sm:$0xff] }
 0xada   : > { %2063 = vmatpush3.bf16.msra.mxu0 %v2194_v62 }
 0xb5d   : > { %v1493_v39 = vpop.xlane.xlu1 %1492 }
 0xb5e   : > { %v1495_v40 = vmul.f32 0.03125, %v1493_v39 }
 0xb60   : > { %v1496_v41 = vsub.f32 %v1490_v37, %v1495_v40 }
 0xb62   : > { %v1497_v42 = vmul.f32 %v1496_v41, %v1496_v41  ;;  %v1517_v27 = vmul.f32 %v1895_v55, %v1496_v41 }
 0xb64   : > { %v1498_v43 = vsel %vm658_vm1, %v1497_v42, 0.0 }
 0xb65   : > { %1499 = vadd.xlane.f32.xlu0 %v1498_v43 }
 0xbf2   : > { %v1500_v47 = vpop.xlane.xlu0 %1499 }
 0xbf3   : > { %v1501_v48 = vmul.f32 0.03125, %v1500_v47 }
 0xbf5   : > { %2211 = vrsqrt.f32 %v1501_v48  ;;  %vm1504_vm5 = vcmp.eq.f32.partialorder %v1501_v48, inf  ;;  %v1507_v51 = vand.u32 2147483648, %v1501_v48  ;;  %vm1506_vm6 = vcmp.eq.f32.partialorder %v1501_v48, 0.0 }
 0xbff   : > { %v2212_v49 = vpop.eup %2211 }
 0xc00   : > { %v1503_v50 = vmul.f32 %v2212_v49, %v1501_v48 }
 0xc02   : > { %v1505_v52 = vsel %vm1504_vm5, %v1501_v48, %v1503_v50 }
 0xc03   : > { %v1508_v53 = vsel %vm1506_vm6, %v1507_v51, %v1505_v52 }
 0xc04   : > { %v1509_v54 = vadd.f32 1e-10, %v1508_v53 }
 0xc06   : > { %2213 = vrcp.f32 %v1509_v54 }
 0xc10   : > { %v2214_v28 = vpop.eup %2213 }
 0xc11   : > { %v1518_v58 = vmul.f32 %v2214_v28, %v1517_v27 }
 0xc13   : > { %v1525_v59 = vadd.f32 %v1896_v57, %v1518_v58 }
 0xc15   : > { %v1526_v60 = vpack.c.bf16 %v1525_v59, %v1525_v59 }
 0xc17   : > { %2053 = vmatmul.mubr.msk.bf16.vlgmr.msra.gmra.mrb[32].mxu1 %vm658_vm1, %v1526_v60 }
 0xcea   : > { %v1587_v1 = vpop.f32.mrb[32].mxu1 }
 0xceb   : > { %v1588_v2 = vadd.f32 %v1897_v63, %v1587_v1  ;;  %v2054_v3 = vpop.f32.mrb[33].mxu1 }
 0xcec   : > { %v1590_v4 = vpop.f32.mrb[34].mxu1 }
 0xced   : > { %v1593_v5 = vmax.f32 %v1588_v2, 0.0  ;;  %v2055_v7 = vpop.f32.mrb[35].mxu1 }
 0xcef   : > { %v1594_v8 = vpack.c.bf16 %v1593_v5, %v1593_v5 }
 0xcf1   : > { %2065 = vmatmul.mubr.msk.bf16.vlgmr.msra.gmra.mrb[28].mxu0 %vm1634_vm7, %v1594_v8 }
 0xdc4   : > { %v1672_v9 = vpop.f32.mrb[28].mxu0 }
 0xdc5   : > { %v1673_v10 = vadd.f32 %v1901_v0, %v1672_v9  ;;  %v2066_v11 = vpop.f32.mrb[29].mxu0 }
 0xdc6   : > { %v1675_v12 = vpop.f32.mrb[30].mxu0 }
 0xdc7   : > { %v2067_v13 = vpop.f32.mrb[31].mxu0  ;;  %v1678_v14 = vadd.f32 %v1673_v10, %v1525_v59 }
 0xdc9   : > { %v1679_v15 = vsel %vm658_vm1, %v1678_v14, 0.0 }
 0xdca   : > { %1680 = vadd.xlane.f32.xlu0 %v1679_v15 }
 0xe57   : > { %v1681_v16 = vpop.xlane.xlu0 %1680 }
 0xe58   : > { %v1682_v17 = vmul.f32 0.03125, %v1681_v16 }
 0xe5a   : > { %v1683_v18 = vsub.f32 %v1678_v14, %v1682_v17 }
 0xe5c   : > { %v1684_v19 = vmul.f32 %v1683_v18, %v1683_v18  ;;  %v1698_v30 = vmul.f32 %v1895_v55, %v1683_v18 }
 0xe5e   : > { %v1685_v20 = vsel %vm658_vm1, %v1684_v19, 0.0 }
 0xe5f   : > { %1686 = vadd.xlane.f32.xlu0 %v1685_v20 }
 0xeec   : > { %v1687_v56 = vpop.xlane.xlu0 %1686 }
 0xeed   : > { %v1688_v21 = vmul.f32 0.03125, %v1687_v56 }
 0xeef   : > { %2215 = vrsqrt.f32 %v1688_v21  ;;  %vm1691_vm8 = vcmp.eq.f32.partialorder %v1688_v21, inf  ;;  %v1694_v24 = vand.u32 2147483648, %v1688_v21  ;;  %vm1693_vm9 = vcmp.eq.f32.partialorder %v1688_v21, 0.0 }
 0xef9   : > { %v2216_v22 = vpop.eup %2215 }
 0xefa   : > { %v1690_v23 = vmul.f32 %v2216_v22, %v1688_v21 }
 0xefc   : > { %v1692_v25 = vsel %vm1691_vm8, %v1688_v21, %v1690_v23 }
 0xefd   : > { %v1695_v26 = vsel %vm1693_vm9, %v1694_v24, %v1692_v25 }
 0xefe   : > { %v1696_v29 = vadd.f32 1e-10, %v1695_v26 }
 0xf00   : > { %2217 = vrcp.f32 %v1696_v29 }
 0xf0a   : > { %v2218_v31 = vpop.eup %2217 }
 0xf0b   : > { %v1699_v32 = vmul.f32 %v2218_v31, %v1698_v30 }
 0xf0d   : > { %v1700_v33 = vadd.f32 %v1896_v57, %v1699_v32 }
 0xf0f   : > { %1701 = vst.msk [vmem:[%s616_s22] sm:$0xff] %vm658_vm1, %v1700_v33 }
 0xf10   : > { %2372 = shalt.err (!%p2369_p6)
}
 0xf11   : > { %s2373_s20 = scalar_lea.hbm %s2931_s23, 128  ;;  %s2377_s18 = scalar_lea.hbm %s3041_s19, 256 }
 0xf12   : > { %p2374_p7 = scmp.ne.s32.totalorder %s2931_s23, %s2373_s20  ;;  %p2378_p4 = scmp.lt.u32.totalorder %s2931_s23, %s3041_s19 }
 0xf13   : > { %p2379_p8 = scmp.lt.u32.totalorder %s2377_s18, %s2373_s20  ;;  %p2381_p1 = scmp.lt.u32.totalorder %s2373_s20, %s2931_s23 }
 0xf14   : > { %p2375_p9 = pnand %p2374_p7, %p3042_p10 }
 0xf15   : > { %p2380_p13 = por %p2379_p8, %p2378_p4 }
 0xf16   : > { %p2376_p12 = pneg %p2375_p9 }
 0xf17   : > { %p2382_p11 = por %p2381_p1, %p2380_p13 }
 0xf19   : > { %p2383_p0 = pnand %p2382_p11, %p2376_p12 }
 0xf1b   : > { %2386 = shalt.err (!%p2383_p0)
}
 0xf1c   : > { %2088 = dma.vmem_to_hbm [thread:$0]  (%p3042_p10), %s2933_s16, 128, %s2931_s23, %s1703_s17  }
 0xf1d PF: > { %s3043_s15 = sld [smem:[#allocation22_spill]]  ;;  %s3044_s13 = sld [smem:[#allocation18_spill]] }
 0xf1e   : > { %s3045_s22 = sld [smem:[#allocation25_spill]] }
 0xf23   : > { %p2120_p2 = scmp.ge.s32.totalorder %s3043_s15, 2  ;;  %s1729_s27 = sand.u32 1, %s3044_s13  }
 0xf24   : > { %p3046_p3 = scmp.ne.s32.totalorder %s3045_s22, 0  ;;  %s1730_s30 = scalar_lea.sflag [#allocation6], %s1729_s27 }
 0xf26   : > { %p2107_p5 = pnand %p2120_p2, %p3046_p3 }
 0xf28   : > { %2424 = dma.done.wait (!%p2107_p5), %s1730_s30, 128  }
 0xf29   : > { %2426 = vsyncadd (!%p2107_p5), %s1730_s30, 4294967168  ;;  %s32_s26 = sadd.s32 1, %s3043_s15   ;;  %s3047_s21 = sld [smem:[#allocation19_spill]] }
 0xf2a   : > { %p29_p6 = scmp.ge.s32.totalorder %s32_s26, 4   ;;  %s3048_s22 = sld [smem:[#allocation20_spill]] }
 0xf2b   : > { %s3049_s23 = sld [smem:[#allocation26_spill]]  ;;  %s3050_s24 = sld [smem:[#allocation21_spill]] }
 0xf2c   : > { %s3051_s25 = sld [smem:[#allocation23_spill]]  ;;  %31 = sbr.rel (!%p29_p6) target bundleno = 14 (0xe), region = 147 }
 0xf33   :  { %1735 = vsyncpa [#allocation5], 1 }
 0xf34   :  { %1737 = vsyncpa [#allocation5 + $0x1], 1 }
 0xf35   :  { %1738 = vsyncpa [#allocation8], 1 }
 0xf36   :  { %1739 = vsyncpa [#allocation11], 1 }
 0xf37   :  { %1740 = vsyncpa [#allocation6], 1 }
 0xf38   :  { %1742 = vsyncpa [#allocation6 + $0x1], 1 }

</bundles_post_ra>
